<compile_context>
chip_gen: v6e
topology: v6e:2x2x1
jax: 0.10.0
libtpu: 0.0.40
codegen_flags: <defaults>
</compile_context>

<pallas_src>
import functools

import jax
import jax.numpy as jnp
from jax import lax
from jax.experimental import pallas as pl
from jax.experimental.pallas import tpu as pltpu


def music_lstm_kernel(x_ref,           # (T*Bp, In)  time-major, flattened
                      w_ih0_ref,       # (In, 4H)
                      b0_ref,          # (1, 4H)   b_ih0 + b_hh0
                      w_hh0_ref,       # (H, 4H)
                      w1_ref,          # (2H, 4H)  [W_ih1^T ; W_hh1^T]
                      b1_ref,          # (1, 4H)   b_ih1 + b_hh1
                      bn_scale_ref,    # (1, H)    gamma / sqrt(var + eps)
                      bn_shift_ref,    # (1, H)    beta - mean * scale
                      wfc_ref,         # (H, Op)   fc1 weight, lane-padded
                      bfc_ref,         # (1, Op)   fc1 bias, lane-padded
                      out_ref,         # (Bp, Op)
                      *, T, Bp):
    H = w_hh0_ref.shape[0]
    G = 4 * H

    # ---- hoisted layer-0 input projection: one MXU dot for all timesteps ----
    xw0 = jnp.dot(x_ref[...], w_ih0_ref[...],
                  preferred_element_type=jnp.float32) + b0_ref[...]   # (T*Bp, 4H)

    w_hh0 = w_hh0_ref[...]
    w1 = w1_ref[...]
    b1 = jnp.broadcast_to(b1_ref[...], (Bp, G))   # broadcast once, outside the loop

    def gate_act(pre):
        # Two full-width (Bp, 4H = 128 lane) EUP passes, then aligned static slices.
        sg = jax.nn.sigmoid(pre)
        th = jnp.tanh(pre)
        i = sg[:, 0 * H:1 * H]
        f = sg[:, 1 * H:2 * H]
        g = th[:, 2 * H:3 * H]
        o = sg[:, 3 * H:4 * H]
        return i, f, g, o

    zeros = jnp.zeros((Bp, H), jnp.float32)
    h0, c0, h1, c1 = zeros, zeros, zeros, zeros

    for t in range(T):  # static unroll (T is small & known at trace time)
        # ---- layer 0: only the recurrent dot remains on the per-step chain ----
        pre0 = xw0[t * Bp:(t + 1) * Bp, :] + jnp.dot(
            h0, w_hh0, preferred_element_type=jnp.float32)
        i0, f0, g0, o0 = gate_act(pre0)
        c0 = f0 * c0 + i0 * g0
        h0 = o0 * jnp.tanh(c0)
        # ---- layer 1: single fused dot over [x_t (= h0), h1] ----
        pre1 = jnp.dot(jnp.concatenate([h0, h1], axis=1), w1,
                       preferred_element_type=jnp.float32) + b1
        i1, f1, g1, o1 = gate_act(pre1)
        c1 = f1 * c1 + i1 * g1
        h1 = o1 * jnp.tanh(c1)

    # dropout(0.3): eval mode -> identity.
    # TODO(synk): training-mode dropout / batch-statistics BN are not implemented
    #             (eval-mode inference semantics are reproduced).

    # BatchNorm1d (eval; affine folded in the wrapper) + ReLU
    y = jnp.maximum(h1 * bn_scale_ref[...] + bn_shift_ref[...], 0.0)

    # LogSoftmax over the feature axis (dim=1)
    m = jnp.max(y, axis=-1, keepdims=True)
    y = y - m
    y = y - jnp.log(jnp.sum(jnp.exp(y), axis=-1, keepdims=True))

    # fc1: Linear(hidden, output) -- output padded to a full 128-lane store
    out_ref[...] = jnp.dot(y, wfc_ref[...],
                           preferred_element_type=jnp.float32) + bfc_ref[...]


def music_lstm_forward(x, params):
    """x: (B, T, input_size) batch-first, like the PyTorch module. Returns (B, O)."""
    B, T, In = x.shape
    H = params["w_hh0"].shape[1]                 # w_hh0: (4H, H)
    O = params["w_fc"].shape[0]
    Bp = max(8, ((B + 7) // 8) * 8)              # pad batch to full sublanes
    Op = max(128, ((O + 127) // 128) * 128)      # pad output to full lanes

    f32 = jnp.float32
    x_tm = jnp.transpose(x, (1, 0, 2)).astype(f32)          # time-major (T, B, In)
    x_tm = jnp.pad(x_tm, ((0, 0), (0, Bp - B), (0, 0)))
    x_flat = x_tm.reshape(T * Bp, In)

    # Fold the two LSTM biases; stack layer-1 weights for the fused per-step dot.
    b0 = (params["b_ih0"] + params["b_hh0"])[None, :].astype(f32)
    b1 = (params["b_ih1"] + params["b_hh1"])[None, :].astype(f32)
    w1_stacked = jnp.concatenate(
        [params["w_ih1"].T, params["w_hh1"].T], axis=0).astype(f32)   # (2H, 4H)

    # Fold eval-mode BatchNorm into a single scale/shift.
    eps = 1e-5
    bn_scale = params["bn_gamma"] * lax.rsqrt(params["bn_var"] + eps)   # (H,)
    bn_shift = params["bn_beta"] - params["bn_mean"] * bn_scale         # (H,)

    # Lane-pad fc1 so the final store is a full, unmasked (Bp, 128) tile.
    w_fc_p = jnp.zeros((H, Op), f32).at[:, :O].set(params["w_fc"].T.astype(f32))
    b_fc_p = jnp.zeros((1, Op), f32).at[:, :O].set(params["b_fc"].astype(f32))

    inputs = (
        x_flat,
        params["w_ih0"].T.astype(f32), b0,
        params["w_hh0"].T.astype(f32),
        w1_stacked, b1,
        bn_scale[None, :].astype(f32), bn_shift[None, :].astype(f32),
        w_fc_p, b_fc_p,
    )

    flops = (2 * T * Bp * In * 4 * H            # hoisted input projection
             + T * 2 * Bp * H * 4 * H           # layer-0 recurrent dot
             + T * 2 * Bp * (2 * H) * 4 * H     # layer-1 fused dot
             + 2 * Bp * H * Op)                 # fc1
    transcendentals = T * Bp * 18 * H + Bp * H
    bytes_accessed = 4 * (sum(int(a.size) for a in inputs) + Bp * Op)

    out = pl.pallas_call(
        functools.partial(music_lstm_kernel, T=T, Bp=Bp),
        out_shape=jax.ShapeDtypeStruct((Bp, Op), f32),
        in_specs=[pl.BlockSpec(memory_space=pltpu.VMEM) for _ in inputs],
        out_specs=pl.BlockSpec(memory_space=pltpu.VMEM),
        cost_estimate=pl.CostEstimate(flops=flops,
                                      transcendentals=transcendentals,
                                      bytes_accessed=bytes_accessed),
    )(*inputs)
    return out[:B, :O]


def music_lstm_reference(x, params):
    """Pure-JAX reference mirroring the PyTorch module (eval mode)."""
    B, T, _ = x.shape
    H = params["w_hh0"].shape[1]
    hp = lax.Precision.HIGHEST

    def cell(x_t, h, c, w_ih, w_hh, b_ih, b_hh):
        g = (jnp.dot(x_t, w_ih.T, precision=hp)
             + jnp.dot(h, w_hh.T, precision=hp) + b_ih + b_hh)
        i = jax.nn.sigmoid(g[:, 0 * H:1 * H])
        f = jax.nn.sigmoid(g[:, 1 * H:2 * H])
        gg = jnp.tanh(g[:, 2 * H:3 * H])
        o = jax.nn.sigmoid(g[:, 3 * H:4 * H])
        c = f * c + i * gg
        h = o * jnp.tanh(c)
        return h, c

    z = jnp.zeros((B, H), jnp.float32)
    h0, c0, h1, c1 = z, z, z, z
    for t in range(T):
        h0, c0 = cell(x[:, t, :], h0, c0, params["w_ih0"], params["w_hh0"],
                      params["b_ih0"], params["b_hh0"])
        h1, c1 = cell(h0, h1, c1, params["w_ih1"], params["w_hh1"],
                      params["b_ih1"], params["b_hh1"])
    eps = 1e-5
    y = ((h1 - params["bn_mean"]) * lax.rsqrt(params["bn_var"] + eps)
         * params["bn_gamma"] + params["bn_beta"])
    y = jnp.maximum(y, 0.0)
    y = jax.nn.log_softmax(y, axis=1)
    return jnp.dot(y, params["w_fc"].T, precision=hp) + params["b_fc"]


def init_params(key, input_size, hidden_size, output_size):
    k = 1.0 / jnp.sqrt(hidden_size)
    keys = jax.random.split(key, 10)

    def u(kk, shape):
        return jax.random.uniform(kk, shape, jnp.float32, -k, k)

    return {
        # LSTM layer 0 (input_size -> hidden)
        "w_ih0": u(keys[0], (4 * hidden_size, input_size)),
        "w_hh0": u(keys[1], (4 * hidden_size, hidden_size)),
        "b_ih0": u(keys[2], (4 * hidden_size,)),
        "b_hh0": u(keys[3], (4 * hidden_size,)),
        # LSTM layer 1 (hidden -> hidden)
        "w_ih1": u(keys[4], (4 * hidden_size, hidden_size)),
        "w_hh1": u(keys[5], (4 * hidden_size, hidden_size)),
        "b_ih1": u(keys[6], (4 * hidden_size,)),
        "b_hh1": u(keys[7], (4 * hidden_size,)),
        # BatchNorm1d(hidden) eval-mode params / running stats
        "bn_gamma": jnp.ones((hidden_size,), jnp.float32),
        "bn_beta": jnp.zeros((hidden_size,), jnp.float32),
        "bn_mean": jnp.zeros((hidden_size,), jnp.float32),
        "bn_var": jnp.ones((hidden_size,), jnp.float32),
        # fc1: Linear(hidden, output)
        "w_fc": u(keys[8], (output_size, hidden_size)),
        "b_fc": u(keys[9], (output_size,)),
    }


if __name__ == "__main__":
    # Small shapes consistent with the module; num_layers=2 is baked into the kernel.
    B, T = 4, 8
    input_size, hidden_size, output_size = 16, 32, 16

    key = jax.random.PRNGKey(0)
    k_x, k_p = jax.random.split(key)
    x = jax.random.normal(k_x, (B, T, input_size), jnp.float32)
    params = init_params(k_p, input_size, hidden_size, output_size)

    out = music_lstm_forward(x, params)
    jax.block_until_ready(out)
    assert out.shape == (B, output_size)

    ref = music_lstm_reference(x, params)
    max_err = float(jnp.max(jnp.abs(out - ref)))
    assert jnp.allclose(out, ref, atol=5e-2, rtol=5e-2), max_err

    print("KERNEL_OK")
</pallas_src>

<mosaic_0001>
module attributes {stable_mosaic.version = 11 : i64} {
  func.func @music_lstm_kernel(%arg0: memref<64x16xf32, #tpu.memory_space<vmem>>, %arg1: memref<16x128xf32, #tpu.memory_space<vmem>>, %arg2: memref<1x128xf32, #tpu.memory_space<vmem>>, %arg3: memref<32x128xf32, #tpu.memory_space<vmem>>, %arg4: memref<64x128xf32, #tpu.memory_space<vmem>>, %arg5: memref<1x128xf32, #tpu.memory_space<vmem>>, %arg6: memref<1x32xf32, #tpu.memory_space<vmem>>, %arg7: memref<1x32xf32, #tpu.memory_space<vmem>>, %arg8: memref<32x128xf32, #tpu.memory_space<vmem>>, %arg9: memref<1x128xf32, #tpu.memory_space<vmem>>, %arg10: memref<8x128xf32, #tpu.memory_space<vmem>>) attributes {dimension_semantics = [], scalar_prefetch = 0 : i64, scratch_operands = 0 : i64, tpu.core_type = #tpu.core_type<tc>} {
    %c0 = arith.constant 0 : index
    %c0_0 = arith.constant 0 : index
    %0 = vector.load %arg0[%c0, %c0_0] : memref<64x16xf32, #tpu.memory_space<vmem>>, vector<64x16xf32>
    %c0_1 = arith.constant 0 : index
    %c0_2 = arith.constant 0 : index
    %1 = vector.load %arg1[%c0_1, %c0_2] : memref<16x128xf32, #tpu.memory_space<vmem>>, vector<16x128xf32>
    %cst = arith.constant dense<0.000000e+00> : vector<64x128xf32>
    %2 = tpu.matmul %0, %1, %cst {dimension_numbers = #tpu.dot_dimension_numbers<[1], [0], [0], [1], [0, 0, 1, 1], [], []>} : vector<64x16xf32>, vector<16x128xf32>, vector<64x128xf32> -> vector<64x128xf32>
    %c0_3 = arith.constant 0 : index
    %c0_4 = arith.constant 0 : index
    %3 = vector.load %arg2[%c0_3, %c0_4] : memref<1x128xf32, #tpu.memory_space<vmem>>, vector<1x128xf32>
    %4 = vector.broadcast %3 : vector<1x128xf32> to vector<64x128xf32>
    %5 = arith.addf %2, %4 : vector<64x128xf32>
    %c0_5 = arith.constant 0 : index
    %c0_6 = arith.constant 0 : index
    %6 = vector.load %arg3[%c0_5, %c0_6] : memref<32x128xf32, #tpu.memory_space<vmem>>, vector<32x128xf32>
    %c0_7 = arith.constant 0 : index
    %c0_8 = arith.constant 0 : index
    %7 = vector.load %arg4[%c0_7, %c0_8] : memref<64x128xf32, #tpu.memory_space<vmem>>, vector<64x128xf32>
    %c0_9 = arith.constant 0 : index
    %c0_10 = arith.constant 0 : index
    %8 = vector.load %arg5[%c0_9, %c0_10] : memref<1x128xf32, #tpu.memory_space<vmem>>, vector<1x128xf32>
    %9 = vector.shape_cast %8 : vector<1x128xf32> to vector<1x128xf32>
    %10 = vector.broadcast %9 : vector<1x128xf32> to vector<8x128xf32>
    %cst_11 = arith.constant 0.000000e+00 : f32
    %11 = vector.broadcast %cst_11 : f32 to vector<8x32xf32>
    %12 = vector.extract_strided_slice %5 {offsets = [0, 0], sizes = [8, 128], strides = [1, 1]} : vector<64x128xf32> to vector<8x128xf32>
    %cst_12 = arith.constant dense<0.000000e+00> : vector<8x128xf32>
    %13 = tpu.matmul %11, %6, %cst_12 {dimension_numbers = #tpu.dot_dimension_numbers<[1], [0], [0], [1], [0, 0, 1, 1], [], []>} : vector<8x32xf32>, vector<32x128xf32>, vector<8x128xf32> -> vector<8x128xf32>
    %14 = arith.addf %12, %13 : vector<8x128xf32>
    %15 = arith.negf %14 : vector<8x128xf32>
    %16 = math.exp %15 : vector<8x128xf32>
    %cst_13 = arith.constant 1.000000e+00 : f32
    %17 = vector.broadcast %cst_13 : f32 to vector<8x128xf32>
    %18 = arith.addf %17, %16 : vector<8x128xf32>
    %19 = arith.divf %17, %18 : vector<8x128xf32>
    %20 = math.tanh %14 : vector<8x128xf32>
    %21 = vector.extract_strided_slice %19 {offsets = [0, 0], sizes = [8, 32], strides = [1, 1]} : vector<8x128xf32> to vector<8x32xf32>
    %22 = vector.extract_strided_slice %19 {offsets = [0, 32], sizes = [8, 32], strides = [1, 1]} : vector<8x128xf32> to vector<8x32xf32>
    %23 = vector.extract_strided_slice %20 {offsets = [0, 64], sizes = [8, 32], strides = [1, 1]} : vector<8x128xf32> to vector<8x32xf32>
    %24 = vector.extract_strided_slice %19 {offsets = [0, 96], sizes = [8, 32], strides = [1, 1]} : vector<8x128xf32> to vector<8x32xf32>
    %25 = arith.mulf %22, %11 : vector<8x32xf32>
    %26 = arith.mulf %21, %23 : vector<8x32xf32>
    %27 = arith.addf %25, %26 : vector<8x32xf32>
    %28 = math.tanh %27 : vector<8x32xf32>
    %29 = arith.mulf %24, %28 : vector<8x32xf32>
    %30 = tpu.concatenate %29, %11 in 1 : vector<8x32xf32>, vector<8x32xf32> -> vector<8x64xf32>
    %cst_14 = arith.constant dense<0.000000e+00> : vector<8x128xf32>
    %31 = tpu.matmul %30, %7, %cst_14 {dimension_numbers = #tpu.dot_dimension_numbers<[1], [0], [0], [1], [0, 0, 1, 1], [], []>} : vector<8x64xf32>, vector<64x128xf32>, vector<8x128xf32> -> vector<8x128xf32>
    %32 = arith.addf %31, %10 : vector<8x128xf32>
    %33 = arith.negf %32 : vector<8x128xf32>
    %34 = math.exp %33 : vector<8x128xf32>
    %cst_15 = arith.constant 1.000000e+00 : f32
    %35 = vector.broadcast %cst_15 : f32 to vector<8x128xf32>
    %36 = arith.addf %35, %34 : vector<8x128xf32>
    %37 = arith.divf %35, %36 : vector<8x128xf32>
    %38 = math.tanh %32 : vector<8x128xf32>
    %39 = vector.extract_strided_slice %37 {offsets = [0, 0], sizes = [8, 32], strides = [1, 1]} : vector<8x128xf32> to vector<8x32xf32>
    %40 = vector.extract_strided_slice %37 {offsets = [0, 32], sizes = [8, 32], strides = [1, 1]} : vector<8x128xf32> to vector<8x32xf32>
    %41 = vector.extract_strided_slice %38 {offsets = [0, 64], sizes = [8, 32], strides = [1, 1]} : vector<8x128xf32> to vector<8x32xf32>
    %42 = vector.extract_strided_slice %37 {offsets = [0, 96], sizes = [8, 32], strides = [1, 1]} : vector<8x128xf32> to vector<8x32xf32>
    %43 = arith.mulf %40, %11 : vector<8x32xf32>
    %44 = arith.mulf %39, %41 : vector<8x32xf32>
    %45 = arith.addf %43, %44 : vector<8x32xf32>
    %46 = math.tanh %45 : vector<8x32xf32>
    %47 = arith.mulf %42, %46 : vector<8x32xf32>
    %48 = vector.extract_strided_slice %5 {offsets = [8, 0], sizes = [8, 128], strides = [1, 1]} : vector<64x128xf32> to vector<8x128xf32>
    %cst_16 = arith.constant dense<0.000000e+00> : vector<8x128xf32>
    %49 = tpu.matmul %29, %6, %cst_16 {dimension_numbers = #tpu.dot_dimension_numbers<[1], [0], [0], [1], [0, 0, 1, 1], [], []>} : vector<8x32xf32>, vector<32x128xf32>, vector<8x128xf32> -> vector<8x128xf32>
    %50 = arith.addf %48, %49 : vector<8x128xf32>
    %51 = arith.negf %50 : vector<8x128xf32>
    %52 = math.exp %51 : vector<8x128xf32>
    %cst_17 = arith.constant 1.000000e+00 : f32
    %53 = vector.broadcast %cst_17 : f32 to vector<8x128xf32>
    %54 = arith.addf %53, %52 : vector<8x128xf32>
    %55 = arith.divf %53, %54 : vector<8x128xf32>
    %56 = math.tanh %50 : vector<8x128xf32>
    %57 = vector.extract_strided_slice %55 {offsets = [0, 0], sizes = [8, 32], strides = [1, 1]} : vector<8x128xf32> to vector<8x32xf32>
    %58 = vector.extract_strided_slice %55 {offsets = [0, 32], sizes = [8, 32], strides = [1, 1]} : vector<8x128xf32> to vector<8x32xf32>
    %59 = vector.extract_strided_slice %56 {offsets = [0, 64], sizes = [8, 32], strides = [1, 1]} : vector<8x128xf32> to vector<8x32xf32>
    %60 = vector.extract_strided_slice %55 {offsets = [0, 96], sizes = [8, 32], strides = [1, 1]} : vector<8x128xf32> to vector<8x32xf32>
    %61 = arith.mulf %58, %27 : vector<8x32xf32>
    %62 = arith.mulf %57, %59 : vector<8x32xf32>
    %63 = arith.addf %61, %62 : vector<8x32xf32>
    %64 = math.tanh %63 : vector<8x32xf32>
    %65 = arith.mulf %60, %64 : vector<8x32xf32>
    %66 = tpu.concatenate %65, %47 in 1 : vector<8x32xf32>, vector<8x32xf32> -> vector<8x64xf32>
    %cst_18 = arith.constant dense<0.000000e+00> : vector<8x128xf32>
    %67 = tpu.matmul %66, %7, %cst_18 {dimension_numbers = #tpu.dot_dimension_numbers<[1], [0], [0], [1], [0, 0, 1, 1], [], []>} : vector<8x64xf32>, vector<64x128xf32>, vector<8x128xf32> -> vector<8x128xf32>
    %68 = arith.addf %67, %10 : vector<8x128xf32>
    %69 = arith.negf %68 : vector<8x128xf32>
    %70 = math.exp %69 : vector<8x128xf32>
    %cst_19 = arith.constant 1.000000e+00 : f32
    %71 = vector.broadcast %cst_19 : f32 to vector<8x128xf32>
    %72 = arith.addf %71, %70 : vector<8x128xf32>
    %73 = arith.divf %71, %72 : vector<8x128xf32>
    %74 = math.tanh %68 : vector<8x128xf32>
    %75 = vector.extract_strided_slice %73 {offsets = [0, 0], sizes = [8, 32], strides = [1, 1]} : vector<8x128xf32> to vector<8x32xf32>
    %76 = vector.extract_strided_slice %73 {offsets = [0, 32], sizes = [8, 32], strides = [1, 1]} : vector<8x128xf32> to vector<8x32xf32>
    %77 = vector.extract_strided_slice %74 {offsets = [0, 64], sizes = [8, 32], strides = [1, 1]} : vector<8x128xf32> to vector<8x32xf32>
    %78 = vector.extract_strided_slice %73 {offsets = [0, 96], sizes = [8, 32], strides = [1, 1]} : vector<8x128xf32> to vector<8x32xf32>
    %79 = arith.mulf %76, %45 : vector<8x32xf32>
    %80 = arith.mulf %75, %77 : vector<8x32xf32>
    %81 = arith.addf %79, %80 : vector<8x32xf32>
    %82 = math.tanh %81 : vector<8x32xf32>
    %83 = arith.mulf %78, %82 : vector<8x32xf32>
    %84 = vector.extract_strided_slice %5 {offsets = [16, 0], sizes = [8, 128], strides = [1, 1]} : vector<64x128xf32> to vector<8x128xf32>
    %cst_20 = arith.constant dense<0.000000e+00> : vector<8x128xf32>
    %85 = tpu.matmul %65, %6, %cst_20 {dimension_numbers = #tpu.dot_dimension_numbers<[1], [0], [0], [1], [0, 0, 1, 1], [], []>} : vector<8x32xf32>, vector<32x128xf32>, vector<8x128xf32> -> vector<8x128xf32>
    %86 = arith.addf %84, %85 : vector<8x128xf32>
    %87 = arith.negf %86 : vector<8x128xf32>
    %88 = math.exp %87 : vector<8x128xf32>
    %cst_21 = arith.constant 1.000000e+00 : f32
    %89 = vector.broadcast %cst_21 : f32 to vector<8x128xf32>
    %90 = arith.addf %89, %88 : vector<8x128xf32>
    %91 = arith.divf %89, %90 : vector<8x128xf32>
    %92 = math.tanh %86 : vector<8x128xf32>
    %93 = vector.extract_strided_slice %91 {offsets = [0, 0], sizes = [8, 32], strides = [1, 1]} : vector<8x128xf32> to vector<8x32xf32>
    %94 = vector.extract_strided_slice %91 {offsets = [0, 32], sizes = [8, 32], strides = [1, 1]} : vector<8x128xf32> to vector<8x32xf32>
    %95 = vector.extract_strided_slice %92 {offsets = [0, 64], sizes = [8, 32], strides = [1, 1]} : vector<8x128xf32> to vector<8x32xf32>
    %96 = vector.extract_strided_slice %91 {offsets = [0, 96], sizes = [8, 32], strides = [1, 1]} : vector<8x128xf32> to vector<8x32xf32>
    %97 = arith.mulf %94, %63 : vector<8x32xf32>
    %98 = arith.mulf %93, %95 : vector<8x32xf32>
    %99 = arith.addf %97, %98 : vector<8x32xf32>
    %100 = math.tanh %99 : vector<8x32xf32>
    %101 = arith.mulf %96, %100 : vector<8x32xf32>
    %102 = tpu.concatenate %101, %83 in 1 : vector<8x32xf32>, vector<8x32xf32> -> vector<8x64xf32>
    %cst_22 = arith.constant dense<0.000000e+00> : vector<8x128xf32>
    %103 = tpu.matmul %102, %7, %cst_22 {dimension_numbers = #tpu.dot_dimension_numbers<[1], [0], [0], [1], [0, 0, 1, 1], [], []>} : vector<8x64xf32>, vector<64x128xf32>, vector<8x128xf32> -> vector<8x128xf32>
    %104 = arith.addf %103, %10 : vector<8x128xf32>
    %105 = arith.negf %104 : vector<8x128xf32>
    %106 = math.exp %105 : vector<8x128xf32>
    %cst_23 = arith.constant 1.000000e+00 : f32
    %107 = vector.broadcast %cst_23 : f32 to vector<8x128xf32>
    %108 = arith.addf %107, %106 : vector<8x128xf32>
    %109 = arith.divf %107, %108 : vector<8x128xf32>
    %110 = math.tanh %104 : vector<8x128xf32>
    %111 = vector.extract_strided_slice %109 {offsets = [0, 0], sizes = [8, 32], strides = [1, 1]} : vector<8x128xf32> to vector<8x32xf32>
    %112 = vector.extract_strided_slice %109 {offsets = [0, 32], sizes = [8, 32], strides = [1, 1]} : vector<8x128xf32> to vector<8x32xf32>
    %113 = vector.extract_strided_slice %110 {offsets = [0, 64], sizes = [8, 32], strides = [1, 1]} : vector<8x128xf32> to vector<8x32xf32>
    %114 = vector.extract_strided_slice %109 {offsets = [0, 96], sizes = [8, 32], strides = [1, 1]} : vector<8x128xf32> to vector<8x32xf32>
    %115 = arith.mulf %112, %81 : vector<8x32xf32>
    %116 = arith.mulf %111, %113 : vector<8x32xf32>
    %117 = arith.addf %115, %116 : vector<8x32xf32>
    %118 = math.tanh %117 : vector<8x32xf32>
    %119 = arith.mulf %114, %118 : vector<8x32xf32>
    %120 = vector.extract_strided_slice %5 {offsets = [24, 0], sizes = [8, 128], strides = [1, 1]} : vector<64x128xf32> to vector<8x128xf32>
    %cst_24 = arith.constant dense<0.000000e+00> : vector<8x128xf32>
    %121 = tpu.matmul %101, %6, %cst_24 {dimension_numbers = #tpu.dot_dimension_numbers<[1], [0], [0], [1], [0, 0, 1, 1], [], []>} : vector<8x32xf32>, vector<32x128xf32>, vector<8x128xf32> -> vector<8x128xf32>
    %122 = arith.addf %120, %121 : vector<8x128xf32>
    %123 = arith.negf %122 : vector<8x128xf32>
    %124 = math.exp %123 : vector<8x128xf32>
    %cst_25 = arith.constant 1.000000e+00 : f32
    %125 = vector.broadcast %cst_25 : f32 to vector<8x128xf32>
    %126 = arith.addf %125, %124 : vector<8x128xf32>
    %127 = arith.divf %125, %126 : vector<8x128xf32>
    %128 = math.tanh %122 : vector<8x128xf32>
    %129 = vector.extract_strided_slice %127 {offsets = [0, 0], sizes = [8, 32], strides = [1, 1]} : vector<8x128xf32> to vector<8x32xf32>
    %130 = vector.extract_strided_slice %127 {offsets = [0, 32], sizes = [8, 32], strides = [1, 1]} : vector<8x128xf32> to vector<8x32xf32>
    %131 = vector.extract_strided_slice %128 {offsets = [0, 64], sizes = [8, 32], strides = [1, 1]} : vector<8x128xf32> to vector<8x32xf32>
    %132 = vector.extract_strided_slice %127 {offsets = [0, 96], sizes = [8, 32], strides = [1, 1]} : vector<8x128xf32> to vector<8x32xf32>
    %133 = arith.mulf %130, %99 : vector<8x32xf32>
    %134 = arith.mulf %129, %131 : vector<8x32xf32>
    %135 = arith.addf %133, %134 : vector<8x32xf32>
    %136 = math.tanh %135 : vector<8x32xf32>
    %137 = arith.mulf %132, %136 : vector<8x32xf32>
    %138 = tpu.concatenate %137, %119 in 1 : vector<8x32xf32>, vector<8x32xf32> -> vector<8x64xf32>
    %cst_26 = arith.constant dense<0.000000e+00> : vector<8x128xf32>
    %139 = tpu.matmul %138, %7, %cst_26 {dimension_numbers = #tpu.dot_dimension_numbers<[1], [0], [0], [1], [0, 0, 1, 1], [], []>} : vector<8x64xf32>, vector<64x128xf32>, vector<8x128xf32> -> vector<8x128xf32>
    %140 = arith.addf %139, %10 : vector<8x128xf32>
    %141 = arith.negf %140 : vector<8x128xf32>
    %142 = math.exp %141 : vector<8x128xf32>
    %cst_27 = arith.constant 1.000000e+00 : f32
    %143 = vector.broadcast %cst_27 : f32 to vector<8x128xf32>
    %144 = arith.addf %143, %142 : vector<8x128xf32>
    %145 = arith.divf %143, %144 : vector<8x128xf32>
    %146 = math.tanh %140 : vector<8x128xf32>
    %147 = vector.extract_strided_slice %145 {offsets = [0, 0], sizes = [8, 32], strides = [1, 1]} : vector<8x128xf32> to vector<8x32xf32>
    %148 = vector.extract_strided_slice %145 {offsets = [0, 32], sizes = [8, 32], strides = [1, 1]} : vector<8x128xf32> to vector<8x32xf32>
    %149 = vector.extract_strided_slice %146 {offsets = [0, 64], sizes = [8, 32], strides = [1, 1]} : vector<8x128xf32> to vector<8x32xf32>
    %150 = vector.extract_strided_slice %145 {offsets = [0, 96], sizes = [8, 32], strides = [1, 1]} : vector<8x128xf32> to vector<8x32xf32>
    %151 = arith.mulf %148, %117 : vector<8x32xf32>
    %152 = arith.mulf %147, %149 : vector<8x32xf32>
    %153 = arith.addf %151, %152 : vector<8x32xf32>
    %154 = math.tanh %153 : vector<8x32xf32>
    %155 = arith.mulf %150, %154 : vector<8x32xf32>
    %156 = vector.extract_strided_slice %5 {offsets = [32, 0], sizes = [8, 128], strides = [1, 1]} : vector<64x128xf32> to vector<8x128xf32>
    %cst_28 = arith.constant dense<0.000000e+00> : vector<8x128xf32>
    %157 = tpu.matmul %137, %6, %cst_28 {dimension_numbers = #tpu.dot_dimension_numbers<[1], [0], [0], [1], [0, 0, 1, 1], [], []>} : vector<8x32xf32>, vector<32x128xf32>, vector<8x128xf32> -> vector<8x128xf32>
    %158 = arith.addf %156, %157 : vector<8x128xf32>
    %159 = arith.negf %158 : vector<8x128xf32>
    %160 = math.exp %159 : vector<8x128xf32>
    %cst_29 = arith.constant 1.000000e+00 : f32
    %161 = vector.broadcast %cst_29 : f32 to vector<8x128xf32>
    %162 = arith.addf %161, %160 : vector<8x128xf32>
    %163 = arith.divf %161, %162 : vector<8x128xf32>
    %164 = math.tanh %158 : vector<8x128xf32>
    %165 = vector.extract_strided_slice %163 {offsets = [0, 0], sizes = [8, 32], strides = [1, 1]} : vector<8x128xf32> to vector<8x32xf32>
    %166 = vector.extract_strided_slice %163 {offsets = [0, 32], sizes = [8, 32], strides = [1, 1]} : vector<8x128xf32> to vector<8x32xf32>
    %167 = vector.extract_strided_slice %164 {offsets = [0, 64], sizes = [8, 32], strides = [1, 1]} : vector<8x128xf32> to vector<8x32xf32>
    %168 = vector.extract_strided_slice %163 {offsets = [0, 96], sizes = [8, 32], strides = [1, 1]} : vector<8x128xf32> to vector<8x32xf32>
    %169 = arith.mulf %166, %135 : vector<8x32xf32>
    %170 = arith.mulf %165, %167 : vector<8x32xf32>
    %171 = arith.addf %169, %170 : vector<8x32xf32>
    %172 = math.tanh %171 : vector<8x32xf32>
    %173 = arith.mulf %168, %172 : vector<8x32xf32>
    %174 = tpu.concatenate %173, %155 in 1 : vector<8x32xf32>, vector<8x32xf32> -> vector<8x64xf32>
    %cst_30 = arith.constant dense<0.000000e+00> : vector<8x128xf32>
    %175 = tpu.matmul %174, %7, %cst_30 {dimension_numbers = #tpu.dot_dimension_numbers<[1], [0], [0], [1], [0, 0, 1, 1], [], []>} : vector<8x64xf32>, vector<64x128xf32>, vector<8x128xf32> -> vector<8x128xf32>
    %176 = arith.addf %175, %10 : vector<8x128xf32>
    %177 = arith.negf %176 : vector<8x128xf32>
    %178 = math.exp %177 : vector<8x128xf32>
    %cst_31 = arith.constant 1.000000e+00 : f32
    %179 = vector.broadcast %cst_31 : f32 to vector<8x128xf32>
    %180 = arith.addf %179, %178 : vector<8x128xf32>
    %181 = arith.divf %179, %180 : vector<8x128xf32>
    %182 = math.tanh %176 : vector<8x128xf32>
    %183 = vector.extract_strided_slice %181 {offsets = [0, 0], sizes = [8, 32], strides = [1, 1]} : vector<8x128xf32> to vector<8x32xf32>
    %184 = vector.extract_strided_slice %181 {offsets = [0, 32], sizes = [8, 32], strides = [1, 1]} : vector<8x128xf32> to vector<8x32xf32>
    %185 = vector.extract_strided_slice %182 {offsets = [0, 64], sizes = [8, 32], strides = [1, 1]} : vector<8x128xf32> to vector<8x32xf32>
    %186 = vector.extract_strided_slice %181 {offsets = [0, 96], sizes = [8, 32], strides = [1, 1]} : vector<8x128xf32> to vector<8x32xf32>
    %187 = arith.mulf %184, %153 : vector<8x32xf32>
    %188 = arith.mulf %183, %185 : vector<8x32xf32>
    %189 = arith.addf %187, %188 : vector<8x32xf32>
    %190 = math.tanh %189 : vector<8x32xf32>
    %191 = arith.mulf %186, %190 : vector<8x32xf32>
    %192 = vector.extract_strided_slice %5 {offsets = [40, 0], sizes = [8, 128], strides = [1, 1]} : vector<64x128xf32> to vector<8x128xf32>
    %cst_32 = arith.constant dense<0.000000e+00> : vector<8x128xf32>
    %193 = tpu.matmul %173, %6, %cst_32 {dimension_numbers = #tpu.dot_dimension_numbers<[1], [0], [0], [1], [0, 0, 1, 1], [], []>} : vector<8x32xf32>, vector<32x128xf32>, vector<8x128xf32> -> vector<8x128xf32>
    %194 = arith.addf %192, %193 : vector<8x128xf32>
    %195 = arith.negf %194 : vector<8x128xf32>
    %196 = math.exp %195 : vector<8x128xf32>
    %cst_33 = arith.constant 1.000000e+00 : f32
    %197 = vector.broadcast %cst_33 : f32 to vector<8x128xf32>
    %198 = arith.addf %197, %196 : vector<8x128xf32>
    %199 = arith.divf %197, %198 : vector<8x128xf32>
    %200 = math.tanh %194 : vector<8x128xf32>
    %201 = vector.extract_strided_slice %199 {offsets = [0, 0], sizes = [8, 32], strides = [1, 1]} : vector<8x128xf32> to vector<8x32xf32>
    %202 = vector.extract_strided_slice %199 {offsets = [0, 32], sizes = [8, 32], strides = [1, 1]} : vector<8x128xf32> to vector<8x32xf32>
    %203 = vector.extract_strided_slice %200 {offsets = [0, 64], sizes = [8, 32], strides = [1, 1]} : vector<8x128xf32> to vector<8x32xf32>
    %204 = vector.extract_strided_slice %199 {offsets = [0, 96], sizes = [8, 32], strides = [1, 1]} : vector<8x128xf32> to vector<8x32xf32>
    %205 = arith.mulf %202, %171 : vector<8x32xf32>
    %206 = arith.mulf %201, %203 : vector<8x32xf32>
    %207 = arith.addf %205, %206 : vector<8x32xf32>
    %208 = math.tanh %207 : vector<8x32xf32>
    %209 = arith.mulf %204, %208 : vector<8x32xf32>
    %210 = tpu.concatenate %209, %191 in 1 : vector<8x32xf32>, vector<8x32xf32> -> vector<8x64xf32>
    %cst_34 = arith.constant dense<0.000000e+00> : vector<8x128xf32>
    %211 = tpu.matmul %210, %7, %cst_34 {dimension_numbers = #tpu.dot_dimension_numbers<[1], [0], [0], [1], [0, 0, 1, 1], [], []>} : vector<8x64xf32>, vector<64x128xf32>, vector<8x128xf32> -> vector<8x128xf32>
    %212 = arith.addf %211, %10 : vector<8x128xf32>
    %213 = arith.negf %212 : vector<8x128xf32>
    %214 = math.exp %213 : vector<8x128xf32>
    %cst_35 = arith.constant 1.000000e+00 : f32
    %215 = vector.broadcast %cst_35 : f32 to vector<8x128xf32>
    %216 = arith.addf %215, %214 : vector<8x128xf32>
    %217 = arith.divf %215, %216 : vector<8x128xf32>
    %218 = math.tanh %212 : vector<8x128xf32>
    %219 = vector.extract_strided_slice %217 {offsets = [0, 0], sizes = [8, 32], strides = [1, 1]} : vector<8x128xf32> to vector<8x32xf32>
    %220 = vector.extract_strided_slice %217 {offsets = [0, 32], sizes = [8, 32], strides = [1, 1]} : vector<8x128xf32> to vector<8x32xf32>
    %221 = vector.extract_strided_slice %218 {offsets = [0, 64], sizes = [8, 32], strides = [1, 1]} : vector<8x128xf32> to vector<8x32xf32>
    %222 = vector.extract_strided_slice %217 {offsets = [0, 96], sizes = [8, 32], strides = [1, 1]} : vector<8x128xf32> to vector<8x32xf32>
    %223 = arith.mulf %220, %189 : vector<8x32xf32>
    %224 = arith.mulf %219, %221 : vector<8x32xf32>
    %225 = arith.addf %223, %224 : vector<8x32xf32>
    %226 = math.tanh %225 : vector<8x32xf32>
    %227 = arith.mulf %222, %226 : vector<8x32xf32>
    %228 = vector.extract_strided_slice %5 {offsets = [48, 0], sizes = [8, 128], strides = [1, 1]} : vector<64x128xf32> to vector<8x128xf32>
    %cst_36 = arith.constant dense<0.000000e+00> : vector<8x128xf32>
    %229 = tpu.matmul %209, %6, %cst_36 {dimension_numbers = #tpu.dot_dimension_numbers<[1], [0], [0], [1], [0, 0, 1, 1], [], []>} : vector<8x32xf32>, vector<32x128xf32>, vector<8x128xf32> -> vector<8x128xf32>
    %230 = arith.addf %228, %229 : vector<8x128xf32>
    %231 = arith.negf %230 : vector<8x128xf32>
    %232 = math.exp %231 : vector<8x128xf32>
    %cst_37 = arith.constant 1.000000e+00 : f32
    %233 = vector.broadcast %cst_37 : f32 to vector<8x128xf32>
    %234 = arith.addf %233, %232 : vector<8x128xf32>
    %235 = arith.divf %233, %234 : vector<8x128xf32>
    %236 = math.tanh %230 : vector<8x128xf32>
    %237 = vector.extract_strided_slice %235 {offsets = [0, 0], sizes = [8, 32], strides = [1, 1]} : vector<8x128xf32> to vector<8x32xf32>
    %238 = vector.extract_strided_slice %235 {offsets = [0, 32], sizes = [8, 32], strides = [1, 1]} : vector<8x128xf32> to vector<8x32xf32>
    %239 = vector.extract_strided_slice %236 {offsets = [0, 64], sizes = [8, 32], strides = [1, 1]} : vector<8x128xf32> to vector<8x32xf32>
    %240 = vector.extract_strided_slice %235 {offsets = [0, 96], sizes = [8, 32], strides = [1, 1]} : vector<8x128xf32> to vector<8x32xf32>
    %241 = arith.mulf %238, %207 : vector<8x32xf32>
    %242 = arith.mulf %237, %239 : vector<8x32xf32>
    %243 = arith.addf %241, %242 : vector<8x32xf32>
    %244 = math.tanh %243 : vector<8x32xf32>
    %245 = arith.mulf %240, %244 : vector<8x32xf32>
    %246 = tpu.concatenate %245, %227 in 1 : vector<8x32xf32>, vector<8x32xf32> -> vector<8x64xf32>
    %cst_38 = arith.constant dense<0.000000e+00> : vector<8x128xf32>
    %247 = tpu.matmul %246, %7, %cst_38 {dimension_numbers = #tpu.dot_dimension_numbers<[1], [0], [0], [1], [0, 0, 1, 1], [], []>} : vector<8x64xf32>, vector<64x128xf32>, vector<8x128xf32> -> vector<8x128xf32>
    %248 = arith.addf %247, %10 : vector<8x128xf32>
    %249 = arith.negf %248 : vector<8x128xf32>
    %250 = math.exp %249 : vector<8x128xf32>
    %cst_39 = arith.constant 1.000000e+00 : f32
    %251 = vector.broadcast %cst_39 : f32 to vector<8x128xf32>
    %252 = arith.addf %251, %250 : vector<8x128xf32>
    %253 = arith.divf %251, %252 : vector<8x128xf32>
    %254 = math.tanh %248 : vector<8x128xf32>
    %255 = vector.extract_strided_slice %253 {offsets = [0, 0], sizes = [8, 32], strides = [1, 1]} : vector<8x128xf32> to vector<8x32xf32>
    %256 = vector.extract_strided_slice %253 {offsets = [0, 32], sizes = [8, 32], strides = [1, 1]} : vector<8x128xf32> to vector<8x32xf32>
    %257 = vector.extract_strided_slice %254 {offsets = [0, 64], sizes = [8, 32], strides = [1, 1]} : vector<8x128xf32> to vector<8x32xf32>
    %258 = vector.extract_strided_slice %253 {offsets = [0, 96], sizes = [8, 32], strides = [1, 1]} : vector<8x128xf32> to vector<8x32xf32>
    %259 = arith.mulf %256, %225 : vector<8x32xf32>
    %260 = arith.mulf %255, %257 : vector<8x32xf32>
    %261 = arith.addf %259, %260 : vector<8x32xf32>
    %262 = math.tanh %261 : vector<8x32xf32>
    %263 = arith.mulf %258, %262 : vector<8x32xf32>
    %264 = vector.extract_strided_slice %5 {offsets = [56, 0], sizes = [8, 128], strides = [1, 1]} : vector<64x128xf32> to vector<8x128xf32>
    %cst_40 = arith.constant dense<0.000000e+00> : vector<8x128xf32>
    %265 = tpu.matmul %245, %6, %cst_40 {dimension_numbers = #tpu.dot_dimension_numbers<[1], [0], [0], [1], [0, 0, 1, 1], [], []>} : vector<8x32xf32>, vector<32x128xf32>, vector<8x128xf32> -> vector<8x128xf32>
    %266 = arith.addf %264, %265 : vector<8x128xf32>
    %267 = arith.negf %266 : vector<8x128xf32>
    %268 = math.exp %267 : vector<8x128xf32>
    %cst_41 = arith.constant 1.000000e+00 : f32
    %269 = vector.broadcast %cst_41 : f32 to vector<8x128xf32>
    %270 = arith.addf %269, %268 : vector<8x128xf32>
    %271 = arith.divf %269, %270 : vector<8x128xf32>
    %272 = math.tanh %266 : vector<8x128xf32>
    %273 = vector.extract_strided_slice %271 {offsets = [0, 0], sizes = [8, 32], strides = [1, 1]} : vector<8x128xf32> to vector<8x32xf32>
    %274 = vector.extract_strided_slice %271 {offsets = [0, 32], sizes = [8, 32], strides = [1, 1]} : vector<8x128xf32> to vector<8x32xf32>
    %275 = vector.extract_strided_slice %272 {offsets = [0, 64], sizes = [8, 32], strides = [1, 1]} : vector<8x128xf32> to vector<8x32xf32>
    %276 = vector.extract_strided_slice %271 {offsets = [0, 96], sizes = [8, 32], strides = [1, 1]} : vector<8x128xf32> to vector<8x32xf32>
    %277 = arith.mulf %274, %243 : vector<8x32xf32>
    %278 = arith.mulf %273, %275 : vector<8x32xf32>
    %279 = arith.addf %277, %278 : vector<8x32xf32>
    %280 = math.tanh %279 : vector<8x32xf32>
    %281 = arith.mulf %276, %280 : vector<8x32xf32>
    %282 = tpu.concatenate %281, %263 in 1 : vector<8x32xf32>, vector<8x32xf32> -> vector<8x64xf32>
    %cst_42 = arith.constant dense<0.000000e+00> : vector<8x128xf32>
    %283 = tpu.matmul %282, %7, %cst_42 {dimension_numbers = #tpu.dot_dimension_numbers<[1], [0], [0], [1], [0, 0, 1, 1], [], []>} : vector<8x64xf32>, vector<64x128xf32>, vector<8x128xf32> -> vector<8x128xf32>
    %284 = arith.addf %283, %10 : vector<8x128xf32>
    %285 = arith.negf %284 : vector<8x128xf32>
    %286 = math.exp %285 : vector<8x128xf32>
    %cst_43 = arith.constant 1.000000e+00 : f32
    %287 = vector.broadcast %cst_43 : f32 to vector<8x128xf32>
    %288 = arith.addf %287, %286 : vector<8x128xf32>
    %289 = arith.divf %287, %288 : vector<8x128xf32>
    %290 = math.tanh %284 : vector<8x128xf32>
    %291 = vector.extract_strided_slice %289 {offsets = [0, 0], sizes = [8, 32], strides = [1, 1]} : vector<8x128xf32> to vector<8x32xf32>
    %292 = vector.extract_strided_slice %289 {offsets = [0, 32], sizes = [8, 32], strides = [1, 1]} : vector<8x128xf32> to vector<8x32xf32>
    %293 = vector.extract_strided_slice %290 {offsets = [0, 64], sizes = [8, 32], strides = [1, 1]} : vector<8x128xf32> to vector<8x32xf32>
    %294 = vector.extract_strided_slice %289 {offsets = [0, 96], sizes = [8, 32], strides = [1, 1]} : vector<8x128xf32> to vector<8x32xf32>
    %295 = arith.mulf %292, %261 : vector<8x32xf32>
    %296 = arith.mulf %291, %293 : vector<8x32xf32>
    %297 = arith.addf %295, %296 : vector<8x32xf32>
    %298 = math.tanh %297 : vector<8x32xf32>
    %299 = arith.mulf %294, %298 : vector<8x32xf32>
    %c0_44 = arith.constant 0 : index
    %c0_45 = arith.constant 0 : index
    %300 = vector.load %arg6[%c0_44, %c0_45] : memref<1x32xf32, #tpu.memory_space<vmem>>, vector<1x32xf32>
    %301 = vector.broadcast %300 : vector<1x32xf32> to vector<8x32xf32>
    %302 = arith.mulf %299, %301 : vector<8x32xf32>
    %c0_46 = arith.constant 0 : index
    %c0_47 = arith.constant 0 : index
    %303 = vector.load %arg7[%c0_46, %c0_47] : memref<1x32xf32, #tpu.memory_space<vmem>>, vector<1x32xf32>
    %304 = vector.broadcast %303 : vector<1x32xf32> to vector<8x32xf32>
    %305 = arith.addf %302, %304 : vector<8x32xf32>
    %cst_48 = arith.constant 0.000000e+00 : f32
    %306 = vector.broadcast %cst_48 : f32 to vector<8x32xf32>
    %307 = arith.maximumf %305, %306 : vector<8x32xf32>
    %cst_49 = arith.constant dense<0xFF800000> : vector<8xf32>
    %308 = vector.multi_reduction <maximumf>, %307, %cst_49 [1] : vector<8x32xf32> to vector<8xf32>
    %309 = vector.shape_cast %308 : vector<8xf32> to vector<8x1xf32>
    %310 = vector.broadcast %309 : vector<8x1xf32> to vector<8x32xf32>
    %311 = arith.subf %307, %310 : vector<8x32xf32>
    %312 = math.exp %311 : vector<8x32xf32>
    %cst_50 = arith.constant dense<0.000000e+00> : vector<8xf32>
    %313 = vector.multi_reduction <add>, %312, %cst_50 [1] : vector<8x32xf32> to vector<8xf32>
    %314 = vector.shape_cast %313 : vector<8xf32> to vector<8x1xf32>
    %315 = math.log %314 : vector<8x1xf32>
    %316 = vector.broadcast %315 : vector<8x1xf32> to vector<8x32xf32>
    %317 = arith.subf %311, %316 : vector<8x32xf32>
    %c0_51 = arith.constant 0 : index
    %c0_52 = arith.constant 0 : index
    %318 = vector.load %arg8[%c0_51, %c0_52] : memref<32x128xf32, #tpu.memory_space<vmem>>, vector<32x128xf32>
    %cst_53 = arith.constant dense<0.000000e+00> : vector<8x128xf32>
    %319 = tpu.matmul %317, %318, %cst_53 {dimension_numbers = #tpu.dot_dimension_numbers<[1], [0], [0], [1], [0, 0, 1, 1], [], []>} : vector<8x32xf32>, vector<32x128xf32>, vector<8x128xf32> -> vector<8x128xf32>
    %c0_54 = arith.constant 0 : index
    %c0_55 = arith.constant 0 : index
    %320 = vector.load %arg9[%c0_54, %c0_55] : memref<1x128xf32, #tpu.memory_space<vmem>>, vector<1x128xf32>
    %321 = vector.broadcast %320 : vector<1x128xf32> to vector<8x128xf32>
    %322 = arith.addf %319, %321 : vector<8x128xf32>
    %c0_56 = arith.constant 0 : index
    %c0_57 = arith.constant 0 : index
    %323 = vector.load %arg10[%c0_56, %c0_57] : memref<8x128xf32, #tpu.memory_space<vmem>>, vector<8x128xf32>
    tpu.vector_store %arg10[%c0_56, %c0_57], %322 {strides = array<i32>} : memref<8x128xf32, #tpu.memory_space<vmem>>, vector<8x128xf32>,
    return
  }
}

</mosaic_0001>

<bundles_post_ra>
// kernel: tpu_custom_call.1
= control target key start
LH: loop header
LB: loop body
LE: loop exit
PB: predicated region body
PF: predicated region fallthrough
CT: control target
= control target key end

     0   :  { %15 = vsyncpa [#allocation3], 0  ;;  %s3260_s0 = inlined_call_operand.vmem [shape: f32[64,16], index: 0, kind: input, shape index: {}]   ;;  %s3261_s1 = inlined_call_operand.vmem [shape: f32[16,128], index: 1, kind: input, shape index: {}]   ;;  %s3262_s2 = inlined_call_operand.vmem [shape: f32[1,128], index: 2, kind: input, shape index: {}]   ;;  %s3263_s3 = inlined_call_operand.hbm [shape: f32[32,128], index: 3, kind: input, shape index: {}]   ;;  %s3264_s4 = inlined_call_operand.vmem [shape: f32[64,128], index: 4, kind: input, shape index: {}]   ;;  %s3265_s5 = inlined_call_operand.vmem [shape: f32[1,128], index: 5, kind: input, shape index: {}]   ;;  %s3266_s6 = inlined_call_operand.vmem [shape: f32[1,32], index: 6, kind: input, shape index: {}]   ;;  %s3267_s7 = inlined_call_operand.vmem [shape: f32[1,32], index: 7, kind: input, shape index: {}]   ;;  %s3268_s8 = inlined_call_operand.hbm [shape: f32[32,128], index: 8, kind: input, shape index: {}]   ;;  %s3269_s9 = inlined_call_operand.vmem [shape: f32[1,128], index: 9, kind: input, shape index: {}]   ;;  %s3270_s10 = inlined_call_operand.hbm [shape: f32[8,128], index: 10, kind: output, shape index: {}]  }
   0x1   :  { %16 = vsyncpa [#allocation6], 0 }
   0x2   :  { %17 = vsyncpa [#allocation4], 0  ;;  %s2655_s13 = smov [#allocation2]  }
   0x3   :  { %s29_s14 = sshll.u32 %s2655_s13, 4  ;;  %s30_s14 = int_to_ptr.vmem [resolvable:$true] %s29_s14 }
   0x4   :  { %s2597_s15 = scalar_lea.vmem %s30_s14, 512  ;;  %p2602_p1 = scmp.lt.s32.totalorder %s30_s14, %s30_s14 }
   0x5   :  { %p2598_p0 = scmp.ne.s32.totalorder %s30_s14, %s2597_s15  ;;  %p2603_p2 = scmp.lt.s32.totalorder %s2597_s15, %s2597_s15 }
   0x7   :  { %p2604_p3 = por %p2603_p2, %p2602_p1 }
   0x9   :  { %p2605_p4 = pnand %p2604_p3, %p2598_p0 }
   0xb   :  { %2608 = shalt.err (!%p2605_p4)
}
   0xc   :  { %s2656_s16 = smov 128   ;;  %s2657_s17 = smov 8  }
   0xd   :  { %35 = dma.hbm_to_vmem [thread:$0]  %s3263_s3, 512, %s30_s14, [#allocation3], %s2656_s16, %s2656_s16, %s2657_s17  }
   0xe   :  { %s2658_s20 = smov [#allocation5]  }
   0xf   :  { %s49_s21 = sshll.u32 %s2658_s20, 4  ;;  %s50_s21 = int_to_ptr.vmem [resolvable:$true] %s49_s21 }
  0x10   :  { %s2617_s22 = scalar_lea.vmem %s50_s21, 512  ;;  %p2622_p6 = scmp.lt.s32.totalorder %s50_s21, %s50_s21 }
  0x11   :  { %p2618_p5 = scmp.ne.s32.totalorder %s50_s21, %s2617_s22  ;;  %p2623_p7 = scmp.lt.s32.totalorder %s2617_s22, %s2617_s22 }
  0x13   :  { %p2624_p8 = por %p2623_p7, %p2622_p6 }
  0x15   :  { %p2625_p9 = pnand %p2624_p8, %p2618_p5 }
  0x17   :  { %2628 = shalt.err (!%p2625_p9)
}
  0x18   :  { %55 = dma.hbm_to_vmem [thread:$0]  %s3268_s8, 512, %s50_s21, [#allocation6], %s2656_s16, %s2656_s16, %s2657_s17  }
  0x19   :  { %2649 = dma.done.wait [#allocation3], 512  }
  0x1a   :  { %2650 = vsyncadd [#allocation3], 4294966784 }
  0x1b   :  { %2651 = dma.done.wait [#allocation6], 512  }
  0x1c   :  { %2652 = vsyncadd [#allocation6], 4294966784  ;;  %v2659_v0 = vmov 0.0   ;;  %vm2660_vm0 = vmmov 0   ;;  %v73_v1 = vld [vmem:[%s3261_s1 + $0x8] sm:$0xff]  ;;  %v2732_v2 = vld [vmem:[#allocation2 + $0x18] sm:$0xff] }
  0x1d   :  { %2182 = vmatprep.subr.mxu1 %v2659_v0  ;;  %2190 = vmatprep.mubr.msk.f32.mxu1 %vm2660_vm0, %v2659_v0  ;;  %v72_v3 = vld [vmem:[%s3261_s1] sm:$0xff]  ;;  %v2738_v4 = vld [vmem:[#allocation2 + $0x10] sm:$0xff]  ;;  %vm81_vm1 = vcmask 130048   ;;  %v65_v6 = vld [vmem:[%s3260_s0 + $0x8] sm:$0xff]  ;;  %s2661_s12 = smov 64   ;;  %s2662_s13 = smov 32  }
  0x1e   :  { %2166 = vmatprep.subr.mxu0 %v73_v1  ;;  %2183 = vmatpush3.msra.mxu1 %v2732_v2  ;;  %v64_v5 = vld [vmem:[%s3260_s0] sm:$0xff]  ;;  %v2748_v7 = vld [vmem:[#allocation2 + $0x8] sm:$0xff]  ;;  %v2787_v26 = vld [vmem:[%s3264_s4 + $0x38] sm:$0xff]  ;;  %vm230_vm2 = vcmask 261120   ;;  %vm334_vm3 = vcmask 523264   ;;  %vm1874_vm4 = vcmask 1048320  }
  0x1f   :  { %2167 = vmatpush3.msra.mxu0 %v73_v1  ;;  %2184 = vmatprep.subr.mxu1 %v2659_v0  ;;  %v2753_v8 = vld [vmem:[#allocation2] sm:$0xff]  ;;  %v66_v27 = vld [vmem:[%s3260_s0 + $0x10] sm:$0xff]  ;;  %v67_v28 = vld [vmem:[%s3260_s0 + $0x18] sm:$0xff] }
  0x20   :  { %2168 = vmatprep.subr.mxu0 %v72_v3  ;;  %2185 = vmatpush3.msra.mxu1 %v2738_v4  ;;  %v2776_v10 = vld [vmem:[%s3262_s2] ss:$0 sm:$0xff]  ;;  %v2800_v29 = vld [vmem:[%s3264_s4 + $0x30] sm:$0xff]  ;;  %v2810_v31 = vld [vmem:[%s3264_s4 + $0x28] sm:$0xff] }
  0x21   :  { %2169 = vmatpush3.msra.mxu0 %v72_v3  ;;  %2170 = vmatprep.mubr.msk.f32.mxu0 %vm81_vm1, %v64_v5  ;;  %v68_v30 = vld [vmem:[%s3260_s0 + $0x20] sm:$0xff]  ;;  %v69_v32 = vld [vmem:[%s3260_s0 + $0x28] sm:$0xff]  ;;  %v70_v34 = vld [vmem:[%s3260_s0 + $0x30] sm:$0xff] }
  0x22   :  { %2186 = vmatprep.subr.mxu1 %v2659_v0  ;;  %2171 = vmatmul.mubr.msk.f32.vlgmr.msra.gmra.mxu0 %vm81_vm1, %v65_v6  ;;  %v2821_v33 = vld [vmem:[%s3264_s4 + $0x20] sm:$0xff]  ;;  %v2832_v35 = vld [vmem:[%s3264_s4 + $0x18] sm:$0xff]  ;;  %v2843_v37 = vld [vmem:[%s3264_s4 + $0x10] sm:$0xff] }
  0x23   :  { %2187 = vmatpush3.msra.mxu1 %v2748_v7  ;;  %2193 = vmatprep.subr.mxu0 %v2659_v0  ;;  %v71_v36 = vld [vmem:[%s3260_s0 + $0x38] sm:$0xff]  ;;  %v2851_v39 = vld [vmem:[%s3264_s4 + $0x8] sm:$0xff]  ;;  %v2859_v40 = vld [vmem:[%s3264_s4] sm:$0xff] }
  0x24   :  { %2188 = vmatprep.subr.mxu1 %v2659_v0  ;;  %2194 = vmatpush3.msra.mxu0 %v2787_v26  ;;  %v2916_v52 = vld [vmem:[%s3265_s5] ss:$0 sm:$0xff] }
  0x25   :  { %2189 = vmatpush3.msra.mxu1 %v2753_v8  ;;  %2173 = vmatprep.mubr.msk.f32.mxu0 %vm81_vm1, %v66_v27 }
  0x26   :  { %2191 = vmatmul.mubr.f32.vlgmr.msra.gmra.mxu1 %v2659_v0  ;;  %2212 = vmatprep.subr.mxu1 %v2659_v0 }
  0x27   :  { %2213 = vmatpush3.msra.mxu1 %v2732_v2  ;;  %2220 = vmatprep.mubr.msk.f32.mxu1 %vm2660_vm0, %v2659_v0 }
  0x28   :  { %2214 = vmatprep.subr.mxu1 %v2659_v0  ;;  %2195 = vmatprep.subr.mxu0 %v2659_v0 }
  0x29   :  { %2215 = vmatpush3.msra.mxu1 %v2738_v4  ;;  %2174 = vmatmul.mubr.msk.f32.gmra.mxu0 %vm81_vm1, %v67_v28 }
  0x2a   :  { %2216 = vmatprep.subr.mxu1 %v2659_v0  ;;  %2196 = vmatpush3.msra.mxu0 %v2800_v29 }
  0x2b   :  { %2217 = vmatpush3.msra.mxu1 %v2748_v7  ;;  %2176 = vmatprep.mubr.msk.f32.mxu0 %vm81_vm1, %v68_v30 }
  0x2c   :  { %2218 = vmatprep.subr.mxu1 %v2659_v0  ;;  %2197 = vmatprep.subr.mxu0 %v2659_v0 }
  0x2d   :  { %2219 = vmatpush3.msra.mxu1 %v2753_v8  ;;  %2198 = vmatpush3.msra.mxu0 %v2810_v31 }
  0x2e   :  { %2223 = vmatprep.subr.mxu1 %v2659_v0  ;;  %2199 = vmatprep.subr.mxu0 %v2659_v0 }
  0x2f   :  { %2177 = vmatmul.mubr.msk.f32.gmra.mxu0 %vm81_vm1, %v69_v32 }
  0x30   :  { %2200 = vmatpush3.msra.mxu0 %v2821_v33  ;;  %2179 = vmatprep.mubr.msk.f32.mxu0 %vm81_vm1, %v70_v34 }
  0x31   :  { %2201 = vmatprep.subr.mxu0 %v2659_v0 }
  0x32   :  { %2202 = vmatpush3.msra.mxu0 %v2832_v35 }
  0x33   :  { %2203 = vmatprep.subr.mxu0 %v2659_v0  ;;  %2180 = vmatmul.mubr.msk.f32.gmra.mxu0 %vm81_vm1, %v71_v36 }
  0x34   :  { %2204 = vmatpush3.msra.mxu0 %v2843_v37  ;;  %2209 = vmatprep.mubr.msk.f32.mxu0 %vm2660_vm0, %v2659_v0 }
  0x35   :  { %2205 = vmatprep.subr.mxu0 %v2659_v0 }
  0x36   :  { %2206 = vmatpush3.msra.mxu0 %v2851_v39 }
  0x37   :  { %2207 = vmatprep.subr.mxu0 %v2659_v0 }
  0x38   :  { %2208 = vmatpush3.msra.mxu0 %v2859_v40 }
  0x39   :  { %2242 = vmatprep.subr.mxu0 %v2659_v0 }
  0xe2   :  { %v2771_v9 = vpop.f32.mrf.mxu0 }
  0xe3   :  { %v178_v50 = vadd.f32 %v2771_v9, %v2776_v10 }
  0xe4   :  { %v172_v11 = vpop.f32.mrf.mxu0 }
  0xe5   :  { %v173_v12 = vadd.f32 %v2776_v10, %v172_v11 }
  0xe6   :  { %v300_v13 = vpop.f32.mrf.mxu1 }
  0xe7   :  { %v304_v14 = vadd.f32 %v300_v13, %v173_v12 }
  0xe8   :  { %v2192_v15 = vpop.f32.mrf.mxu1 }
  0xe9   :  { %2443 = vtanh.f32 %v304_v14  ;;  %v2004_v17 = vmul.f32 -1.442695, %v304_v14  ;;  %v2899_v45 = vpop.f32.mrf.mxu0 }
  0xeb   :  { %2445 = vpow2.f32 %v2004_v17  ;;  %v2901_v46 = vpop.f32.mrf.mxu0 }
  0xec   :  { %v183_v34 = vadd.f32 %v2776_v10, %v2901_v46 }
  0xef   :  { %v2903_v47 = vpop.f32.mrf.mxu0 }
  0xf1   :  { %v2905_v48 = vpop.f32.mrf.mxu0 }
  0xf3   :  { %v2907_v49 = vpop.f32.mrf.mxu0 }
  0xf5   :  { %v2911_v51 = vpop.f32.mrf.mxu0 }
  0xf6   :  { %v2444_v16 = vpop.eup %2443 }
  0xf7   :  { %314 = vrot.lane.b32.xlu0 %v2444_v16, %s2661_s12 }
  0xf8   :  { %v2446_v18 = vpop.eup %2445 }
  0xf9   :  { %v308_v19 = vadd.f32 1.0, %v2446_v18 }
  0xfb   :  { %2447 = vrcp.f32 %v308_v19 }
 0x108   :  { %v2448_v20 = vpop.eup %2447 }
 0x109   :  { %v312_v23 = vmul.f32 0.0, %v2448_v20 }
 0x169   :  { %v315_v21 = vpop.permute.xlu0 %314 }
 0x16a   :  { %v317_v22 = vmul.f32 %v2448_v20, %v315_v21 }
 0x16c   :  { %319 = vrot.lane.b32.xlu0 %v317_v22, %s2662_s13 }
 0x1de   :  { %v320_v24 = vpop.permute.xlu0 %319 }
 0x1df   :  { %v2781_v25 = vadd.f32 %v320_v24, %v312_v23 }
 0x1e1   :  { %2449 = vtanh.f32 %v2781_v25 }
 0x1ee   :  { %v2450_v38 = vpop.eup %2449 }
 0x1ef   :  { %325 = vrot.lane.b32.xlu1 %v2450_v38, %s2661_s12 }
 0x261   :  { %v326_v41 = vpop.permute.xlu1 %325 }
 0x262   :  { %v328_v42 = vmul.f32 %v2448_v20, %v326_v41 }
 0x264   :  { %330 = vrot.lane.b32.xlu1 %v328_v42, %s2662_s13 }
 0x2d6   :  { %v331_v43 = vpop.permute.xlu1 %330 }
 0x2d7   :  { %v333_v44 = vsel %vm230_vm2, %v331_v43, 0.0  ;;  %2221 = vmatmul.mubr.msk.f32.vlgmr.msra.gmra.mxu1 %vm230_vm2, %v331_v43 }
 0x2d8   :  { %2210 = vmatmul.mubr.msk.f32.vlgmr.msra.gmra.mxu0 %vm334_vm3, %v333_v44  ;;  %2224 = vmatpush3.msra.mxu1 %v2787_v26 }
 0x2d9   :  { %2225 = vmatprep.subr.mxu1 %v2659_v0  ;;  %2243 = vmatpush3.msra.mxu0 %v2732_v2 }
 0x2da   :  { %2226 = vmatpush3.msra.mxu1 %v2800_v29  ;;  %2244 = vmatprep.subr.mxu0 %v2659_v0 }
 0x2db   :  { %2227 = vmatprep.subr.mxu1 %v2659_v0  ;;  %2245 = vmatpush3.msra.mxu0 %v2738_v4 }
 0x2dc   :  { %2228 = vmatpush3.msra.mxu1 %v2810_v31  ;;  %2246 = vmatprep.subr.mxu0 %v2659_v0 }
 0x2dd   :  { %2229 = vmatprep.subr.mxu1 %v2659_v0  ;;  %2247 = vmatpush3.msra.mxu0 %v2748_v7 }
 0x2de   :  { %2230 = vmatpush3.msra.mxu1 %v2821_v33  ;;  %2248 = vmatprep.subr.mxu0 %v2659_v0 }
 0x2df   :  { %2231 = vmatprep.subr.mxu1 %v2659_v0  ;;  %2249 = vmatpush3.msra.mxu0 %v2753_v8 }
 0x2e0   :  { %2232 = vmatpush3.msra.mxu1 %v2832_v35  ;;  %2250 = vmatprep.mubr.msk.f32.mxu0 %vm2660_vm0, %v2659_v0 }
 0x2e1   :  { %2233 = vmatprep.subr.mxu1 %v2659_v0  ;;  %2239 = vmatprep.mubr.msk.f32.mxu1 %vm2660_vm0, %v2659_v0 }
 0x2e2   :  { %2234 = vmatpush3.msra.mxu1 %v2843_v37  ;;  %2253 = vmatprep.subr.mxu0 %v2659_v0 }
 0x2e3   :  { %2235 = vmatprep.subr.mxu1 %v2659_v0 }
 0x2e4   :  { %2236 = vmatpush3.msra.mxu1 %v2851_v39 }
 0x2e5   :  { %2237 = vmatprep.subr.mxu1 %v2659_v0 }
 0x2e6   :  { %2238 = vmatpush3.msra.mxu1 %v2859_v40 }
 0x2e7   :  { %2272 = vmatprep.subr.mxu1 %v2659_v0 }
 0x397   :  { %v500_v53 = vpop.f32.mrf.mxu1 }
 0x398   :  { %v504_v54 = vadd.f32 %v500_v53, %v178_v50  ;;  %v404_v55 = vpop.f32.mrf.mxu0 }
 0x399   :  { %v405_v56 = vadd.f32 %v2916_v52, %v404_v55  ;;  %v2222_v57 = vpop.f32.mrf.mxu1 }
 0x39a   :  { %2451 = vtanh.f32 %v504_v54  ;;  %v2211_v58 = vpop.f32.mrf.mxu0  ;;  %v2008_v61 = vmul.f32 -1.442695, %v504_v54 }
 0x39b   :  { %2453 = vtanh.f32 %v405_v56  ;;  %v2006_v62 = vmul.f32 -1.442695, %v405_v56 }
 0x39c   :  { %2455 = vpow2.f32 %v2008_v61 }
 0x39d   :  { %2457 = vpow2.f32 %v2006_v62 }
 0x3a7   :  { %v2452_v59 = vpop.eup %2451 }
 0x3a8   :  { %v2454_v60 = vpop.eup %2453  ;;  %514 = vrot.lane.b32.xlu1 %v2452_v59, %s2661_s12 }
 0x3a9   :  { %417 = vrot.lane.b32.xlu0 %v2454_v60, %s2661_s12  ;;  %v2456_v63 = vpop.eup %2455 }
 0x3aa   :  { %v2458_v1 = vpop.eup %2457  ;;  %v508_v3 = vadd.f32 1.0, %v2456_v63 }
 0x3ab   :  { %v411_v5 = vadd.f32 1.0, %v2458_v1 }
 0x3ac   :  { %2459 = vrcp.f32 %v508_v3 }
 0x3ad   :  { %2461 = vrcp.f32 %v411_v5 }
 0x3b9   :  { %v2460_v6 = vpop.eup %2459 }
 0x3ba   :  { %v2462_v11 = vpop.eup %2461  ;;  %v512_v15 = vmul.f32 %v2460_v6, %v2781_v25 }
 0x3bb   :  { %v415_v17 = vmul.f32 0.0, %v2462_v11 }
 0x41a   :  { %v515_v9 = vpop.permute.xlu1 %514 }
 0x41b   :  { %v517_v12 = vmul.f32 %v2460_v6, %v515_v9  ;;  %v418_v13 = vpop.permute.xlu0 %417 }
 0x41c   :  { %v420_v14 = vmul.f32 %v2462_v11, %v418_v13 }
 0x41d   :  { %519 = vrot.lane.b32.xlu1 %v517_v12, %s2662_s13 }
 0x41e   :  { %422 = vrot.lane.b32.xlu0 %v420_v14, %s2662_s13 }
 0x48f   :  { %v520_v16 = vpop.permute.xlu1 %519 }
 0x490   :  { %v2924_v18 = vadd.f32 %v520_v16, %v512_v15  ;;  %v423_v19 = vpop.permute.xlu0 %422 }
 0x491   :  { %v2926_v20 = vadd.f32 %v423_v19, %v415_v17 }
 0x492   :  { %2463 = vtanh.f32 %v2924_v18 }
 0x493   :  { %2465 = vtanh.f32 %v2926_v20 }
 0x49f   :  { %v2464_v21 = vpop.eup %2463 }
 0x4a0   :  { %v2466_v22 = vpop.eup %2465  ;;  %525 = vrot.lane.b32.xlu1 %v2464_v21, %s2661_s12 }
 0x4a1   :  { %428 = vrot.lane.b32.xlu0 %v2466_v22, %s2661_s12  ;;  %v188_v22 = vadd.f32 %v2899_v45, %v2776_v10 }
 0x512   :  { %v526_v23 = vpop.permute.xlu1 %525 }
 0x513   :  { %v528_v24 = vmul.f32 %v2460_v6, %v526_v23  ;;  %v429_v25 = vpop.permute.xlu0 %428 }
 0x514   :  { %v431_v27 = vmul.f32 %v2462_v11, %v429_v25 }
 0x515   :  { %530 = vrot.lane.b32.xlu0 %v528_v24, %s2662_s13 }
 0x516   :  { %534 = vrot.lane.b32.xlu1 %v431_v27, %s2661_s12 }
 0x587   :  { %v531_v28 = vpop.permute.xlu0 %530 }
 0x588   :  { %v535_v30 = vpop.permute.xlu1 %534  ;;  %2251 = vmatmul.mubr.msk.f32.vlgmr.msra.gmra.mxu0 %vm230_vm2, %v531_v28 }
 0x589   :  { %v537_v32 = vsel %vm230_vm2, %v531_v28, %v535_v30  ;;  %2254 = vmatpush3.msra.mxu0 %v2787_v26  ;;  %2269 = vmatprep.mubr.msk.f32.mxu0 %vm2660_vm0, %v2659_v0 }
 0x58a   :  { %2240 = vmatmul.mubr.msk.f32.vlgmr.msra.gmra.mxu1 %vm334_vm3, %v537_v32  ;;  %2255 = vmatprep.subr.mxu0 %v2659_v0 }
 0x58b   :  { %2256 = vmatpush3.msra.mxu0 %v2800_v29  ;;  %2273 = vmatpush3.msra.mxu1 %v2732_v2 }
 0x58c   :  { %2257 = vmatprep.subr.mxu0 %v2659_v0  ;;  %2274 = vmatprep.subr.mxu1 %v2659_v0 }
 0x58d   :  { %2258 = vmatpush3.msra.mxu0 %v2810_v31  ;;  %2275 = vmatpush3.msra.mxu1 %v2738_v4 }
 0x58e   :  { %2259 = vmatprep.subr.mxu0 %v2659_v0  ;;  %2276 = vmatprep.subr.mxu1 %v2659_v0 }
 0x58f   :  { %2260 = vmatpush3.msra.mxu0 %v2821_v33  ;;  %2277 = vmatpush3.msra.mxu1 %v2748_v7 }
 0x590   :  { %2261 = vmatprep.subr.mxu0 %v2659_v0  ;;  %2278 = vmatprep.subr.mxu1 %v2659_v0 }
 0x591   :  { %2262 = vmatpush3.msra.mxu0 %v2832_v35  ;;  %2279 = vmatpush3.msra.mxu1 %v2753_v8 }
 0x592   :  { %2263 = vmatprep.subr.mxu0 %v2659_v0  ;;  %2280 = vmatprep.mubr.msk.f32.mxu1 %vm2660_vm0, %v2659_v0 }
 0x593   :  { %2264 = vmatpush3.msra.mxu0 %v2843_v37  ;;  %2283 = vmatprep.subr.mxu1 %v2659_v0 }
 0x594   :  { %2265 = vmatprep.subr.mxu0 %v2659_v0 }
 0x595   :  { %2266 = vmatpush3.msra.mxu0 %v2851_v39 }
 0x596   :  { %2267 = vmatprep.subr.mxu0 %v2659_v0 }
 0x597   :  { %2268 = vmatpush3.msra.mxu0 %v2859_v40 }
 0x598   :  { %2302 = vmatprep.subr.mxu0 %v2659_v0 }
 0x648   :  { %v703_v36 = vpop.f32.mrf.mxu0 }
 0x649   :  { %v707_v38 = vadd.f32 %v703_v36, %v183_v34 }
 0x64a   :  { %v607_v41 = vpop.f32.mrf.mxu1  ;;  %v2252_v42 = vpop.f32.mrf.mxu0 }
 0x64b   :  { %2467 = vtanh.f32 %v707_v38  ;;  %v608_v43 = vadd.f32 %v2916_v52, %v607_v41  ;;  %v2012_v54 = vmul.f32 -1.442695, %v707_v38 }
 0x64c   :  { %v2241_v44 = vpop.f32.mrf.mxu1 }
 0x64d   :  { %2469 = vtanh.f32 %v608_v43  ;;  %v2010_v55 = vmul.f32 -1.442695, %v608_v43 }
 0x64e   :  { %2471 = vpow2.f32 %v2012_v54 }
 0x64f   :  { %2473 = vpow2.f32 %v2010_v55 }
 0x658   :  { %v2468_v50 = vpop.eup %2467 }
 0x659   :  { %717 = vrot.lane.b32.xlu1 %v2468_v50, %s2661_s12 }
 0x65a   :  { %v2470_v53 = vpop.eup %2469 }
 0x65b   :  { %620 = vrot.lane.b32.xlu0 %v2470_v53, %s2661_s12  ;;  %v2472_v46 = vpop.eup %2471 }
 0x65c   :  { %v2474_v56 = vpop.eup %2473  ;;  %v711_v57 = vadd.f32 1.0, %v2472_v46 }
 0x65d   :  { %v614_v58 = vadd.f32 1.0, %v2474_v56 }
 0x65e   :  { %2475 = vrcp.f32 %v711_v57 }
 0x65f   :  { %2477 = vrcp.f32 %v614_v58 }
 0x66b   :  { %v2476_v59 = vpop.eup %2475 }
 0x66c   :  { %v2478_v62 = vpop.eup %2477  ;;  %v715_v3 = vmul.f32 %v2476_v59, %v2924_v18 }
 0x66d   :  { %v618_v9 = vmul.f32 %v2478_v62, %v2926_v20 }
 0x6cb   :  { %v718_v60 = vpop.permute.xlu1 %717 }
 0x6cc   :  { %v720_v61 = vmul.f32 %v2476_v59, %v718_v60 }
 0x6cd   :  { %v621_v63 = vpop.permute.xlu0 %620 }
 0x6ce   :  { %722 = vrot.lane.b32.xlu1 %v720_v61, %s2662_s13  ;;  %v623_v1 = vmul.f32 %v2478_v62, %v621_v63 }
 0x6d0   :  { %625 = vrot.lane.b32.xlu0 %v623_v1, %s2662_s13 }
 0x740   :  { %v723_v5 = vpop.permute.xlu1 %722 }
 0x741   :  { %v2973_v6 = vadd.f32 %v723_v5, %v715_v3 }
 0x742   :  { %v626_v11 = vpop.permute.xlu0 %625 }
 0x743   :  { %2479 = vtanh.f32 %v2973_v6  ;;  %v2977_v12 = vadd.f32 %v626_v11, %v618_v9 }
 0x745   :  { %2481 = vtanh.f32 %v2977_v12 }
 0x750   :  { %v2480_v13 = vpop.eup %2479 }
 0x751   :  { %728 = vrot.lane.b32.xlu1 %v2480_v13, %s2661_s12  ;;  %v193_v13 = vadd.f32 %v2776_v10, %v2905_v48 }
 0x752   :  { %v2482_v14 = vpop.eup %2481 }
 0x753   :  { %631 = vrot.lane.b32.xlu0 %v2482_v14, %s2661_s12 }
 0x7c3   :  { %v729_v15 = vpop.permute.xlu1 %728 }
 0x7c4   :  { %v731_v16 = vmul.f32 %v2476_v59, %v729_v15 }
 0x7c5   :  { %v632_v17 = vpop.permute.xlu0 %631 }
 0x7c6   :  { %733 = vrot.lane.b32.xlu0 %v731_v16, %s2662_s13  ;;  %v634_v18 = vmul.f32 %v2478_v62, %v632_v17 }
 0x7c8   :  { %737 = vrot.lane.b32.xlu1 %v634_v18, %s2661_s12 }
 0x838   :  { %v734_v19 = vpop.permute.xlu0 %733 }
 0x839   :  { %2281 = vmatmul.mubr.msk.f32.vlgmr.msra.gmra.mxu1 %vm230_vm2, %v734_v19 }
 0x83a   :  { %2284 = vmatpush3.msra.mxu1 %v2787_v26  ;;  %2299 = vmatprep.mubr.msk.f32.mxu1 %vm2660_vm0, %v2659_v0  ;;  %v738_v20 = vpop.permute.xlu1 %737 }
 0x83b   :  { %2285 = vmatprep.subr.mxu1 %v2659_v0  ;;  %v740_v21 = vsel %vm230_vm2, %v734_v19, %v738_v20 }
 0x83c   :  { %2286 = vmatpush3.msra.mxu1 %v2800_v29  ;;  %2270 = vmatmul.mubr.msk.f32.vlgmr.msra.gmra.mxu0 %vm334_vm3, %v740_v21 }
 0x83d   :  { %2287 = vmatprep.subr.mxu1 %v2659_v0  ;;  %2303 = vmatpush3.msra.mxu0 %v2732_v2 }
 0x83e   :  { %2288 = vmatpush3.msra.mxu1 %v2810_v31  ;;  %2304 = vmatprep.subr.mxu0 %v2659_v0 }
 0x83f   :  { %2289 = vmatprep.subr.mxu1 %v2659_v0  ;;  %2305 = vmatpush3.msra.mxu0 %v2738_v4 }
 0x840   :  { %2290 = vmatpush3.msra.mxu1 %v2821_v33  ;;  %2306 = vmatprep.subr.mxu0 %v2659_v0 }
 0x841   :  { %2291 = vmatprep.subr.mxu1 %v2659_v0  ;;  %2307 = vmatpush3.msra.mxu0 %v2748_v7 }
 0x842   :  { %2292 = vmatpush3.msra.mxu1 %v2832_v35  ;;  %2308 = vmatprep.subr.mxu0 %v2659_v0 }
 0x843   :  { %2293 = vmatprep.subr.mxu1 %v2659_v0  ;;  %2309 = vmatpush3.msra.mxu0 %v2753_v8 }
 0x844   :  { %2294 = vmatpush3.msra.mxu1 %v2843_v37  ;;  %2310 = vmatprep.mubr.msk.f32.mxu0 %vm2660_vm0, %v2659_v0 }
 0x845   :  { %2295 = vmatprep.subr.mxu1 %v2659_v0  ;;  %2313 = vmatprep.subr.mxu0 %v2659_v0 }
 0x846   :  { %2296 = vmatpush3.msra.mxu1 %v2851_v39 }
 0x847   :  { %2297 = vmatprep.subr.mxu1 %v2659_v0 }
 0x848   :  { %2298 = vmatpush3.msra.mxu1 %v2859_v40 }
 0x849   :  { %2332 = vmatprep.subr.mxu1 %v2659_v0 }
 0x8f9   :  { %v906_v23 = vpop.f32.mrf.mxu1 }
 0x8fa   :  { %v910_v24 = vadd.f32 %v906_v23, %v188_v22 }
 0x8fb   :  { %v2282_v25 = vpop.f32.mrf.mxu1 }
 0x8fc   :  { %2483 = vtanh.f32 %v910_v24  ;;  %v810_v27 = vpop.f32.mrf.mxu0  ;;  %v2016_v36 = vmul.f32 -1.442695, %v910_v24 }
 0x8fd   :  { %v811_v28 = vadd.f32 %v2916_v52, %v810_v27 }
 0x8fe   :  { %v2271_v30 = vpop.f32.mrf.mxu0 }
 0x8ff   :  { %2485 = vtanh.f32 %v811_v28  ;;  %v2014_v38 = vmul.f32 -1.442695, %v811_v28 }
 0x900   :  { %2487 = vpow2.f32 %v2016_v36 }
 0x901   :  { %2489 = vpow2.f32 %v2014_v38 }
 0x909   :  { %v2484_v32 = vpop.eup %2483 }
 0x90a   :  { %920 = vrot.lane.b32.xlu1 %v2484_v32, %s2661_s12 }
 0x90c   :  { %v2486_v34 = vpop.eup %2485 }
 0x90d   :  { %823 = vrot.lane.b32.xlu0 %v2486_v34, %s2661_s12  ;;  %v2488_v45 = vpop.eup %2487 }
 0x90e   :  { %v914_v41 = vadd.f32 1.0, %v2488_v45  ;;  %v2490_v42 = vpop.eup %2489 }
 0x90f   :  { %v817_v43 = vadd.f32 1.0, %v2490_v42 }
 0x910   :  { %2491 = vrcp.f32 %v914_v41 }
 0x911   :  { %2493 = vrcp.f32 %v817_v43 }
 0x91d   :  { %v2492_v44 = vpop.eup %2491 }
 0x91e   :  { %v2494_v54 = vpop.eup %2493  ;;  %v918_v56 = vmul.f32 %v2492_v44, %v2973_v6 }
 0x91f   :  { %v821_v59 = vmul.f32 %v2494_v54, %v2977_v12 }
 0x97c   :  { %v921_v50 = vpop.permute.xlu1 %920 }
 0x97d   :  { %v923_v53 = vmul.f32 %v2492_v44, %v921_v50 }
 0x97f   :  { %925 = vrot.lane.b32.xlu1 %v923_v53, %s2662_s13  ;;  %v824_v55 = vpop.permute.xlu0 %823 }
 0x980   :  { %v826_v46 = vmul.f32 %v2494_v54, %v824_v55 }
 0x982   :  { %828 = vrot.lane.b32.xlu0 %v826_v46, %s2662_s13 }
 0x9f1   :  { %v926_v57 = vpop.permute.xlu1 %925 }
 0x9f2   :  { %v3023_v58 = vadd.f32 %v926_v57, %v918_v56 }
 0x9f4   :  { %2495 = vtanh.f32 %v3023_v58  ;;  %v829_v60 = vpop.permute.xlu0 %828 }
 0x9f5   :  { %v3027_v61 = vadd.f32 %v829_v60, %v821_v59 }
 0x9f7   :  { %2497 = vtanh.f32 %v3027_v61 }
 0xa01   :  { %v2496_v62 = vpop.eup %2495 }
 0xa02   :  { %931 = vrot.lane.b32.xlu1 %v2496_v62, %s2661_s12 }
 0xa04   :  { %v2498_v63 = vpop.eup %2497 }
 0xa05   :  { %834 = vrot.lane.b32.xlu0 %v2498_v63, %s2661_s12 }
 0xa74   :  { %v932_v1 = vpop.permute.xlu1 %931 }
 0xa75   :  { %v934_v3 = vmul.f32 %v2492_v44, %v932_v1 }
 0xa77   :  { %936 = vrot.lane.b32.xlu0 %v934_v3, %s2662_s13  ;;  %v835_v5 = vpop.permute.xlu0 %834 }
 0xa78   :  { %v837_v6 = vmul.f32 %v2494_v54, %v835_v5 }
 0xa7a   :  { %940 = vrot.lane.b32.xlu1 %v837_v6, %s2661_s12 }
 0xae9   :  { %v937_v9 = vpop.permute.xlu0 %936 }
 0xaea   :  { %2311 = vmatmul.mubr.msk.f32.vlgmr.msra.gmra.mxu0 %vm230_vm2, %v937_v9 }
 0xaeb   :  { %2314 = vmatpush3.msra.mxu0 %v2787_v26  ;;  %2329 = vmatprep.mubr.msk.f32.mxu0 %vm2660_vm0, %v2659_v0 }
 0xaec   :  { %2315 = vmatprep.subr.mxu0 %v2659_v0  ;;  %v941_v11 = vpop.permute.xlu1 %940 }
 0xaed   :  { %2316 = vmatpush3.msra.mxu0 %v2800_v29  ;;  %v943_v12 = vsel %vm230_vm2, %v937_v9, %v941_v11 }
 0xaee   :  { %2317 = vmatprep.subr.mxu0 %v2659_v0  ;;  %2300 = vmatmul.mubr.msk.f32.vlgmr.msra.gmra.mxu1 %vm334_vm3, %v943_v12 }
 0xaef   :  { %2318 = vmatpush3.msra.mxu0 %v2810_v31  ;;  %2333 = vmatpush3.msra.mxu1 %v2732_v2 }
 0xaf0   :  { %2319 = vmatprep.subr.mxu0 %v2659_v0  ;;  %2334 = vmatprep.subr.mxu1 %v2659_v0 }
 0xaf1   :  { %2320 = vmatpush3.msra.mxu0 %v2821_v33  ;;  %2335 = vmatpush3.msra.mxu1 %v2738_v4 }
 0xaf2   :  { %2321 = vmatprep.subr.mxu0 %v2659_v0  ;;  %2336 = vmatprep.subr.mxu1 %v2659_v0 }
 0xaf3   :  { %2322 = vmatpush3.msra.mxu0 %v2832_v35  ;;  %2337 = vmatpush3.msra.mxu1 %v2748_v7 }
 0xaf4   :  { %2323 = vmatprep.subr.mxu0 %v2659_v0  ;;  %2338 = vmatprep.subr.mxu1 %v2659_v0 }
 0xaf5   :  { %2340 = vmatprep.mubr.msk.f32.mxu1 %vm2660_vm0, %v2659_v0  ;;  %2339 = vmatpush3.msra.mxu1 %v2753_v8 }
 0xaf6   :  { %2324 = vmatpush3.msra.mxu0 %v2843_v37  ;;  %2343 = vmatprep.subr.mxu1 %v2659_v0 }
 0xaf7   :  { %2325 = vmatprep.subr.mxu0 %v2659_v0 }
 0xaf8   :  { %2326 = vmatpush3.msra.mxu0 %v2851_v39 }
 0xaf9   :  { %2327 = vmatprep.subr.mxu0 %v2659_v0 }
 0xafa   :  { %2328 = vmatpush3.msra.mxu0 %v2859_v40 }
 0xafb   :  { %2362 = vmatprep.subr.mxu0 %v2659_v0 }
 0xbaa   :  { %v1109_v14 = vpop.f32.mrf.mxu0 }
 0xbab   :  { %v1113_v15 = vadd.f32 %v1109_v14, %v193_v13 }
 0xbac   :  { %v2312_v16 = vpop.f32.mrf.mxu0 }
 0xbad   :  { %2499 = vtanh.f32 %v1113_v15  ;;  %v2020_v22 = vmul.f32 -1.442695, %v1113_v15 }
 0xbae   :  { %v1013_v17 = vpop.f32.mrf.mxu1 }
 0xbaf   :  { %v1014_v18 = vadd.f32 %v2916_v52, %v1013_v17 }
 0xbb0   :  { %v2301_v19 = vpop.f32.mrf.mxu1 }
 0xbb1   :  { %2501 = vtanh.f32 %v1014_v18  ;;  %v2018_v23 = vmul.f32 -1.442695, %v1014_v18 }
 0xbb2   :  { %2503 = vpow2.f32 %v2020_v22 }
 0xbb3   :  { %2505 = vpow2.f32 %v2018_v23 }
 0xbba   :  { %v2500_v20 = vpop.eup %2499 }
 0xbbb   :  { %1123 = vrot.lane.b32.xlu1 %v2500_v20, %s2661_s12 }
 0xbbe   :  { %v2502_v21 = vpop.eup %2501 }
 0xbbf   :  { %1026 = vrot.lane.b32.xlu0 %v2502_v21, %s2661_s12  ;;  %v2504_v48 = vpop.eup %2503 }
 0xbc0   :  { %v1117_v24 = vadd.f32 1.0, %v2504_v48  ;;  %v2506_v25 = vpop.eup %2505 }
 0xbc1   :  { %v1020_v27 = vadd.f32 1.0, %v2506_v25 }
 0xbc2   :  { %2507 = vrcp.f32 %v1117_v24 }
 0xbc3   :  { %2509 = vrcp.f32 %v1020_v27 }
 0xbcf   :  { %v2508_v28 = vpop.eup %2507 }
 0xbd0   :  { %v2510_v34 = vpop.eup %2509  ;;  %v1121_v45 = vmul.f32 %v2508_v28, %v3023_v58 }
 0xbd1   :  { %v1024_v43 = vmul.f32 %v2510_v34, %v3027_v61 }
 0xc2d   :  { %v1124_v30 = vpop.permute.xlu1 %1123 }
 0xc2e   :  { %v1126_v32 = vmul.f32 %v2508_v28, %v1124_v30 }
 0xc30   :  { %1128 = vrot.lane.b32.xlu1 %v1126_v32, %s2662_s13 }
 0xc31   :  { %v1027_v36 = vpop.permute.xlu0 %1026 }
 0xc32   :  { %v1029_v38 = vmul.f32 %v2510_v34, %v1027_v36 }
 0xc34   :  { %1031 = vrot.lane.b32.xlu0 %v1029_v38, %s2662_s13 }
 0xca2   :  { %v1129_v41 = vpop.permute.xlu1 %1128 }
 0xca3   :  { %v3073_v42 = vadd.f32 %v1129_v41, %v1121_v45 }
 0xca5   :  { %2511 = vtanh.f32 %v3073_v42 }
 0xca6   :  { %v1032_v44 = vpop.permute.xlu0 %1031 }
 0xca7   :  { %v3077_v50 = vadd.f32 %v1032_v44, %v1024_v43 }
 0xca9   :  { %2513 = vtanh.f32 %v3077_v50 }
 0xcb2   :  { %v2512_v53 = vpop.eup %2511 }
 0xcb3   :  { %1134 = vrot.lane.b32.xlu1 %v2512_v53, %s2661_s12 }
 0xcb6   :  { %v2514_v54 = vpop.eup %2513 }
 0xcb7   :  { %1037 = vrot.lane.b32.xlu0 %v2514_v54, %s2661_s12 }
 0xd25   :  { %v1135_v55 = vpop.permute.xlu1 %1134 }
 0xd26   :  { %v1137_v46 = vmul.f32 %v2508_v28, %v1135_v55 }
 0xd28   :  { %1139 = vrot.lane.b32.xlu0 %v1137_v46, %s2662_s13 }
 0xd29   :  { %v1038_v56 = vpop.permute.xlu0 %1037 }
 0xd2a   :  { %v1040_v57 = vmul.f32 %v2510_v34, %v1038_v56 }
 0xd2c   :  { %1143 = vrot.lane.b32.xlu1 %v1040_v57, %s2661_s12 }
 0xd9a   :  { %v1140_v58 = vpop.permute.xlu0 %1139 }
 0xd9b   :  { %2341 = vmatmul.mubr.msk.f32.vlgmr.msra.gmra.mxu1 %vm230_vm2, %v1140_v58 }
 0xd9c   :  { %2344 = vmatpush3.msra.mxu1 %v2787_v26  ;;  %2359 = vmatprep.mubr.msk.f32.mxu1 %vm2660_vm0, %v2659_v0 }
 0xd9d   :  { %2345 = vmatprep.subr.mxu1 %v2659_v0 }
 0xd9e   :  { %2346 = vmatpush3.msra.mxu1 %v2800_v29  ;;  %v1144_v59 = vpop.permute.xlu1 %1143 }
 0xd9f   :  { %2347 = vmatprep.subr.mxu1 %v2659_v0  ;;  %v1146_v60 = vsel %vm230_vm2, %v1140_v58, %v1144_v59 }
 0xda0   :  { %2348 = vmatpush3.msra.mxu1 %v2810_v31  ;;  %2330 = vmatmul.mubr.msk.f32.vlgmr.msra.gmra.mxu0 %vm334_vm3, %v1146_v60 }
 0xda1   :  { %2349 = vmatprep.subr.mxu1 %v2659_v0  ;;  %2363 = vmatpush3.msra.mxu0 %v2732_v2  ;;  %v198_v2 = vadd.f32 %v2903_v47, %v2776_v10 }
 0xda2   :  { %2350 = vmatpush3.msra.mxu1 %v2821_v33  ;;  %2364 = vmatprep.subr.mxu0 %v2659_v0 }
 0xda3   :  { %2351 = vmatprep.subr.mxu1 %v2659_v0  ;;  %2365 = vmatpush3.msra.mxu0 %v2738_v4 }
 0xda4   :  { %2352 = vmatpush3.msra.mxu1 %v2832_v35  ;;  %2366 = vmatprep.subr.mxu0 %v2659_v0 }
 0xda5   :  { %2370 = vmatprep.mubr.msk.f32.mxu0 %vm2660_vm0, %v2659_v0  ;;  %2367 = vmatpush3.msra.mxu0 %v2748_v7 }
 0xda6   :  { %2353 = vmatprep.subr.mxu1 %v2659_v0  ;;  %2368 = vmatprep.subr.mxu0 %v2659_v0 }
 0xda7   :  { %2354 = vmatpush3.msra.mxu1 %v2843_v37  ;;  %2369 = vmatpush3.msra.mxu0 %v2753_v8 }
 0xda8   :  { %2355 = vmatprep.subr.mxu1 %v2659_v0  ;;  %2373 = vmatprep.subr.mxu0 %v2659_v0 }
 0xda9   :  { %2356 = vmatpush3.msra.mxu1 %v2851_v39 }
 0xdaa   :  { %2357 = vmatprep.subr.mxu1 %v2659_v0 }
 0xdab   :  { %2358 = vmatpush3.msra.mxu1 %v2859_v40 }
 0xdac   :  { %2392 = vmatprep.subr.mxu1 %v2659_v0 }
 0xe5b   :  { %v1312_v4 = vpop.f32.mrf.mxu1 }
 0xe5c   :  { %v1316_v7 = vadd.f32 %v1312_v4, %v198_v2 }
 0xe5d   :  { %v2342_v61 = vpop.f32.mrf.mxu1 }
 0xe5e   :  { %2515 = vtanh.f32 %v1316_v7  ;;  %v2024_v5 = vmul.f32 -1.442695, %v1316_v7 }
 0xe60   :  { %v1216_v8 = vpop.f32.mrf.mxu0 }
 0xe61   :  { %v1217_v62 = vadd.f32 %v2916_v52, %v1216_v8 }
 0xe62   :  { %v2331_v63 = vpop.f32.mrf.mxu0 }
 0xe63   :  { %2517 = vtanh.f32 %v1217_v62  ;;  %v2022_v6 = vmul.f32 -1.442695, %v1217_v62 }
 0xe64   :  { %2519 = vpow2.f32 %v2024_v5 }
 0xe65   :  { %2521 = vpow2.f32 %v2022_v6 }
 0xe6b   :  { %v2516_v1 = vpop.eup %2515 }
 0xe6c   :  { %1326 = vrot.lane.b32.xlu1 %v2516_v1, %s2661_s12 }
 0xe70   :  { %v2518_v3 = vpop.eup %2517 }
 0xe71   :  { %1229 = vrot.lane.b32.xlu0 %v2518_v3, %s2661_s12  ;;  %v2520_v47 = vpop.eup %2519 }
 0xe72   :  { %v1320_v9 = vadd.f32 1.0, %v2520_v47  ;;  %v2522_v11 = vpop.eup %2521 }
 0xe73   :  { %v1223_v12 = vadd.f32 1.0, %v2522_v11  ;;  %v2579_v11 = vld [vmem:[%s3264_s4 + $0x38] sm:$0xff] }
 0xe74   :  { %2523 = vrcp.f32 %v1320_v9 }
 0xe75   :  { %2525 = vrcp.f32 %v1223_v12  ;;  %v2580_v12 = vld [vmem:[%s3264_s4 + $0x30] sm:$0xff] }
 0xe81   :  { %v2524_v13 = vpop.eup %2523 }
 0xe82   :  { %v2526_v16 = vpop.eup %2525  ;;  %v1324_v19 = vmul.f32 %v2524_v13, %v3073_v42 }
 0xe83   :  { %v1227_v22 = vmul.f32 %v2526_v16, %v3077_v50 }
 0xede   :  { %v1327_v14 = vpop.permute.xlu1 %1326 }
 0xedf   :  { %v1329_v15 = vmul.f32 %v2524_v13, %v1327_v14 }
 0xee1   :  { %1331 = vrot.lane.b32.xlu1 %v1329_v15, %s2662_s13 }
 0xee3   :  { %v1230_v17 = vpop.permute.xlu0 %1229 }
 0xee4   :  { %v1232_v18 = vmul.f32 %v2526_v16, %v1230_v17  ;;  %v2583_v17 = vld [vmem:[%s3264_s4 + $0x18] sm:$0xff] }
 0xee6   :  { %1234 = vrot.lane.b32.xlu0 %v1232_v18, %s2662_s13  ;;  %v2584_v18 = vld [vmem:[%s3264_s4 + $0x10] sm:$0xff] }
 0xf53   :  { %v1332_v20 = vpop.permute.xlu1 %1331 }
 0xf54   :  { %v3123_v21 = vadd.f32 %v1332_v20, %v1324_v19  ;;  %v2585_v19 = vld [vmem:[%s3264_s4 + $0x8] sm:$0xff]  ;;  %v2586_v20 = vld [vmem:[%s3264_s4] sm:$0xff] }
 0xf56   :  { %2527 = vtanh.f32 %v3123_v21 }
 0xf58   :  { %v1235_v23 = vpop.permute.xlu0 %1234 }
 0xf59   :  { %v3127_v48 = vadd.f32 %v1235_v23, %v1227_v22 }
 0xf5b   :  { %2529 = vtanh.f32 %v3127_v48 }
 0xf63   :  { %v2528_v24 = vpop.eup %2527 }
 0xf64   :  { %1337 = vrot.lane.b32.xlu1 %v2528_v24, %s2661_s12 }
 0xf68   :  { %v2530_v25 = vpop.eup %2529 }
 0xf69   :  { %1240 = vrot.lane.b32.xlu0 %v2530_v25, %s2661_s12 }
 0xfd6   :  { %v1338_v27 = vpop.permute.xlu1 %1337 }
 0xfd7   :  { %v1340_v28 = vmul.f32 %v2524_v13, %v1338_v27  ;;  %v2581_v13 = vld [vmem:[%s3264_s4 + $0x28] sm:$0xff] }
 0xfd9   :  { %1342 = vrot.lane.b32.xlu0 %v1340_v28, %s2662_s13 }
 0xfdb   :  { %v1241_v30 = vpop.permute.xlu0 %1240 }
 0xfdc   :  { %v1243_v32 = vmul.f32 %v2526_v16, %v1241_v30  ;;  %v2582_v16 = vld [vmem:[%s3264_s4 + $0x20] sm:$0xff] }
 0xfde   :  { %1346 = vrot.lane.b32.xlu1 %v1243_v32, %s2661_s12 }
0x104b   :  { %v1343_v34 = vpop.permute.xlu0 %1342 }
0x104c   :  { %2371 = vmatmul.mubr.msk.f32.vlgmr.msra.gmra.mxu0 %vm230_vm2, %v1343_v34 }
0x104d   :  { %2374 = vmatpush3.msra.mxu0 %v2787_v26  ;;  %2389 = vmatprep.mubr.msk.f32.mxu0 %vm2660_vm0, %v2659_v0  ;;  %v2575_v26 = vld [vmem:[#allocation2 + $0x18] sm:$0xff] }
0x104e   :  { %2375 = vmatprep.subr.mxu0 %v2659_v0 }
0x104f   :  { %2376 = vmatpush3.msra.mxu0 %v2800_v29  ;;  %v2576_v29 = vld [vmem:[#allocation2 + $0x10] sm:$0xff] }
0x1050   :  { %2377 = vmatprep.subr.mxu0 %v2659_v0  ;;  %v1347_v36 = vpop.permute.xlu1 %1346 }
0x1051   :  { %2378 = vmatpush3.msra.mxu0 %v2810_v31  ;;  %v1349_v38 = vsel %vm230_vm2, %v1343_v34, %v1347_v36  ;;  %v2577_v31 = vld [vmem:[#allocation2 + $0x8] sm:$0xff] }
0x1052   :  { %2379 = vmatprep.subr.mxu0 %v2659_v0  ;;  %2360 = vmatmul.mubr.msk.f32.vlgmr.msra.gmra.mxu1 %vm334_vm3, %v1349_v38 }
0x1053   :  { %2380 = vmatpush3.msra.mxu0 %v2821_v33  ;;  %2393 = vmatpush3.msra.mxu1 %v2575_v26  ;;  %v2578_v33 = vld [vmem:[#allocation2] sm:$0xff] }
0x1054   :  { %2381 = vmatprep.subr.mxu0 %v2659_v0  ;;  %2394 = vmatprep.subr.mxu1 %v2659_v0 }
0x1055   :  { %2400 = vmatprep.mubr.msk.f32.mxu1 %vm2660_vm0, %v2659_v0  ;;  %2395 = vmatpush3.msra.mxu1 %v2576_v29 }
0x1056   :  { %2382 = vmatpush3.msra.mxu0 %v2832_v35  ;;  %2396 = vmatprep.subr.mxu1 %v2659_v0  ;;  %v203_v35 = vadd.f32 %v2776_v10, %v2911_v51 }
0x1057   :  { %2383 = vmatprep.subr.mxu0 %v2659_v0  ;;  %2397 = vmatpush3.msra.mxu1 %v2577_v31 }
0x1058   :  { %2384 = vmatpush3.msra.mxu0 %v2843_v37  ;;  %2398 = vmatprep.subr.mxu1 %v2659_v0 }
0x1059   :  { %2385 = vmatprep.subr.mxu0 %v2659_v0  ;;  %2399 = vmatpush3.msra.mxu1 %v2578_v33 }
0x105a   :  { %2386 = vmatpush3.msra.mxu0 %v2851_v39  ;;  %2403 = vmatprep.subr.mxu1 %v2659_v0 }
0x105b   :  { %2387 = vmatprep.subr.mxu0 %v2659_v0 }
0x105c   :  { %2388 = vmatpush3.msra.mxu0 %v2859_v40 }
0x105d   :  { %2422 = vmatprep.subr.mxu0 %v2659_v0 }
0x110c   :  { %v1515_v37 = vpop.f32.mrf.mxu0 }
0x110d   :  { %v1519_v45 = vadd.f32 %v1515_v37, %v203_v35 }
0x110e   :  { %v2372_v41 = vpop.f32.mrf.mxu0 }
0x110f   :  { %2531 = vtanh.f32 %v1519_v45  ;;  %v2028_v40 = vmul.f32 -1.442695, %v1519_v45 }
0x1112   :  { %v1419_v42 = vpop.f32.mrf.mxu1 }
0x1113   :  { %v1420_v43 = vadd.f32 %v2916_v52, %v1419_v42 }
0x1114   :  { %v2361_v44 = vpop.f32.mrf.mxu1 }
0x1115   :  { %2533 = vtanh.f32 %v1420_v43  ;;  %v2026_v53 = vmul.f32 -1.442695, %v1420_v43 }
0x1116   :  { %2535 = vpow2.f32 %v2028_v40 }
0x1117   :  { %2537 = vpow2.f32 %v2026_v53 }
0x111c   :  { %v2532_v39 = vpop.eup %2531 }
0x111d   :  { %1529 = vrot.lane.b32.xlu1 %v2532_v39, %s2661_s12 }
0x1122   :  { %v2534_v50 = vpop.eup %2533 }
0x1123   :  { %1432 = vrot.lane.b32.xlu0 %v2534_v50, %s2661_s12  ;;  %v2536_v10 = vpop.eup %2535 }
0x1124   :  { %v1523_v51 = vadd.f32 1.0, %v2536_v10  ;;  %v2538_v54 = vpop.eup %2537 }
0x1125   :  { %v1426_v55 = vadd.f32 1.0, %v2538_v54 }
0x1126   :  { %2539 = vrcp.f32 %v1523_v51 }
0x1127   :  { %2541 = vrcp.f32 %v1426_v55 }
0x1133   :  { %v2540_v46 = vpop.eup %2539 }
0x1134   :  { %v2542_v58 = vpop.eup %2541  ;;  %v1527_v2 = vmul.f32 %v2540_v46, %v3123_v21  ;;  %v2587_v21 = vld [vmem:[%s3262_s2] ss:$0 sm:$0xff] }
0x1135   :  { %v1430_v61 = vmul.f32 %v2542_v58, %v3127_v48  ;;  %v208_v22 = vadd.f32 %v2587_v21, %v2907_v49 }
0x118f   :  { %v1530_v56 = vpop.permute.xlu1 %1529 }
0x1190   :  { %v1532_v57 = vmul.f32 %v2540_v46, %v1530_v56 }
0x1192   :  { %1534 = vrot.lane.b32.xlu1 %v1532_v57, %s2662_s13 }
0x1195   :  { %v1433_v59 = vpop.permute.xlu0 %1432 }
0x1196   :  { %v1435_v60 = vmul.f32 %v2542_v58, %v1433_v59  ;;  %v2588_v59 = vld [vmem:[%s3265_s5] ss:$0 sm:$0xff]  ;;  %s2663_s5 = smov 96  }
0x1198   :  { %1437 = vrot.lane.b32.xlu0 %v1435_v60, %s2662_s13 }
0x1204   :  { %v1535_v4 = vpop.permute.xlu1 %1534 }
0x1205   :  { %v3169_v7 = vadd.f32 %v1535_v4, %v1527_v2 }
0x1207   :  { %2543 = vtanh.f32 %v3169_v7 }
0x120a   :  { %v1438_v8 = vpop.permute.xlu0 %1437 }
0x120b   :  { %v3173_v62 = vadd.f32 %v1438_v8, %v1430_v61 }
0x120d   :  { %2545 = vtanh.f32 %v3173_v62 }
0x1214   :  { %v2544_v63 = vpop.eup %2543 }
0x1215   :  { %1540 = vrot.lane.b32.xlu1 %v2544_v63, %s2661_s12 }
0x121a   :  { %v2546_v1 = vpop.eup %2545 }
0x121b   :  { %1443 = vrot.lane.b32.xlu0 %v2546_v1, %s2661_s12 }
0x1287   :  { %v1541_v3 = vpop.permute.xlu1 %1540 }
0x1288   :  { %v1543_v5 = vmul.f32 %v2540_v46, %v1541_v3  ;;  %v2035_v3 = vld [vmem:[%s3266_s6] ss:$0 sm:$0xff] }
0x128a   :  { %1545 = vrot.lane.b32.xlu0 %v1543_v5, %s2662_s13 }
0x128d   :  { %v1444_v6 = vpop.permute.xlu0 %1443 }
0x128e   :  { %v1446_v47 = vmul.f32 %v2542_v58, %v1444_v6 }
0x1290   :  { %1549 = vrot.lane.b32.xlu1 %v1446_v47, %s2661_s12 }
0x12fc   :  { %v1546_v9 = vpop.permute.xlu0 %1545 }
0x12fd   :  { %2401 = vmatmul.mubr.msk.f32.vlgmr.msra.gmra.mxu1 %vm230_vm2, %v1546_v9 }
0x12fe   :  { %2404 = vmatpush3.msra.mxu1 %v2579_v11  ;;  %2419 = vmatprep.mubr.msk.f32.mxu1 %vm2660_vm0, %v2659_v0  ;;  %v2036_v11 = vld [vmem:[%s3267_s7] ss:$0 sm:$0xff] }
0x12ff   :  { %2405 = vmatprep.subr.mxu1 %v2659_v0 }
0x1300   :  { %2406 = vmatpush3.msra.mxu1 %v2580_v12 }
0x1301   :  { %2407 = vmatprep.subr.mxu1 %v2659_v0 }
0x1302   :  { %2408 = vmatpush3.msra.mxu1 %v2581_v13  ;;  %v1550_v14 = vpop.permute.xlu1 %1549 }
0x1303   :  { %2409 = vmatprep.subr.mxu1 %v2659_v0  ;;  %v1552_v15 = vsel %vm230_vm2, %v1546_v9, %v1550_v14 }
0x1304   :  { %2410 = vmatpush3.msra.mxu1 %v2582_v16  ;;  %2390 = vmatmul.mubr.msk.f32.vlgmr.msra.gmra.mxu0 %vm334_vm3, %v1552_v15 }
0x1305   :  { %2411 = vmatprep.subr.mxu1 %v2659_v0  ;;  %2430 = vmatprep.mubr.msk.f32.mxu0 %vm2660_vm0, %v2659_v0 }
0x1306   :  { %2412 = vmatpush3.msra.mxu1 %v2583_v17 }
0x1307   :  { %2413 = vmatprep.subr.mxu1 %v2659_v0 }
0x1308   :  { %2414 = vmatpush3.msra.mxu1 %v2584_v18 }
0x1309   :  { %2415 = vmatprep.subr.mxu1 %v2659_v0 }
0x130a   :  { %2416 = vmatpush3.msra.mxu1 %v2585_v19 }
0x130b   :  { %2417 = vmatprep.subr.mxu1 %v2659_v0 }
0x130c   :  { %2418 = vmatpush3.msra.mxu1 %v2586_v20 }
0x13bd   :  { %v1718_v23 = vpop.f32.mrf.mxu1 }
0x13be   :  { %v1722_v48 = vadd.f32 %v1718_v23, %v208_v22 }
0x13bf   :  { %v2402_v24 = vpop.f32.mrf.mxu1 }
0x13c0   :  { %2547 = vtanh.f32 %v1722_v48  ;;  %v2032_v34 = vmul.f32 -1.442695, %v1722_v48 }
0x13c4   :  { %v1622_v25 = vpop.f32.mrf.mxu0 }
0x13c5   :  { %v1623_v27 = vadd.f32 %v2916_v52, %v1622_v25  ;;  %v1894_v25 = vld [vmem:[#allocation5 + $0x18] sm:$0xff] }
0x13c6   :  { %v2391_v28 = vpop.f32.mrf.mxu0  ;;  %2423 = vmatpush3.msra.mxu0 %v1894_v25 }
0x13c7   :  { %2549 = vtanh.f32 %v1623_v27  ;;  %v2030_v36 = vmul.f32 -1.442695, %v1623_v27  ;;  %v1893_v27 = vld [vmem:[#allocation5 + $0x10] sm:$0xff]  ;;  %2424 = vmatprep.subr.mxu0 %v2659_v0  ;;  %v1892_v28 = vld [vmem:[#allocation5 + $0x8] sm:$0xff] }
0x13c8   :  { %2551 = vpow2.f32 %v2032_v34  ;;  %2425 = vmatpush3.msra.mxu0 %v1893_v27 }
0x13c9   :  { %2553 = vpow2.f32 %v2030_v36  ;;  %2426 = vmatprep.subr.mxu0 %v2659_v0 }
0x13ca   :  { %2427 = vmatpush3.msra.mxu0 %v1892_v28 }
0x13cb   :  { %2428 = vmatprep.subr.mxu0 %v2659_v0 }
0x13cd   :  { %v2548_v30 = vpop.eup %2547 }
0x13ce   :  { %1732 = vrot.lane.b32.xlu1 %v2548_v30, %s2661_s12  ;;  %v1891_v30 = vld [vmem:[#allocation5] sm:$0xff] }
0x13cf   :  { %2429 = vmatpush3.msra.mxu0 %v1891_v30 }
0x13d4   :  { %v2550_v32 = vpop.eup %2549 }
0x13d5   :  { %1635 = vrot.lane.b32.xlu0 %v2550_v32, %s2661_s12  ;;  %v2552_v49 = vpop.eup %2551 }
0x13d6   :  { %v1726_v38 = vadd.f32 1.0, %v2552_v49  ;;  %v2554_v26 = vpop.eup %2553 }
0x13d7   :  { %v1629_v29 = vadd.f32 1.0, %v2554_v26  ;;  %v2037_v26 = vld [vmem:[%s3269_s9] ss:$0 sm:$0xff] }
0x13d8   :  { %2555 = vrcp.f32 %v1726_v38 }
0x13d9   :  { %2557 = vrcp.f32 %v1629_v29 }
0x13e5   :  { %v2556_v31 = vpop.eup %2555 }
0x13e6   :  { %v2558_v35 = vpop.eup %2557  ;;  %v1730_v41 = vmul.f32 %v2556_v31, %v3169_v7 }
0x13e7   :  { %v1633_v44 = vmul.f32 %v2558_v35, %v3173_v62 }
0x1440   :  { %v1733_v52 = vpop.permute.xlu1 %1732 }
0x1441   :  { %v1735_v33 = vmul.f32 %v2556_v31, %v1733_v52 }
0x1443   :  { %1737 = vrot.lane.b32.xlu1 %v1735_v33, %s2662_s13 }
0x1447   :  { %v1636_v37 = vpop.permute.xlu0 %1635 }
0x1448   :  { %v1638_v45 = vmul.f32 %v2558_v35, %v1636_v37 }
0x144a   :  { %1640 = vrot.lane.b32.xlu0 %v1638_v45, %s2662_s13 }
0x14b5   :  { %v1738_v42 = vpop.permute.xlu1 %1737 }
0x14b6   :  { %v1740_v43 = vadd.f32 %v1738_v42, %v1730_v41 }
0x14b8   :  { %2559 = vtanh.f32 %v1740_v43 }
0x14bc   :  { %v1641_v39 = vpop.permute.xlu0 %1640 }
0x14bd   :  { %v1643_v50 = vadd.f32 %v1641_v39, %v1633_v44 }
0x14bf   :  { %2561 = vtanh.f32 %v1643_v50 }
0x14c5   :  { %v2560_v40 = vpop.eup %2559 }
0x14c6   :  { %1743 = vrot.lane.b32.xlu1 %v2560_v40, %s2661_s12 }
0x14cc   :  { %v2562_v53 = vpop.eup %2561 }
0x14cd   :  { %1646 = vrot.lane.b32.xlu0 %v2562_v53, %s2661_s12 }
0x1538   :  { %v1744_v10 = vpop.permute.xlu1 %1743 }
0x1539   :  { %v1746_v51 = vmul.f32 %v2556_v31, %v1744_v10 }
0x153b   :  { %1748 = vrot.lane.b32.xlu0 %v1746_v51, %s2662_s13 }
0x153f   :  { %v1647_v54 = vpop.permute.xlu0 %1646 }
0x1540   :  { %v1649_v55 = vmul.f32 %v2558_v35, %v1647_v54 }
0x1542   :  { %1752 = vrot.lane.b32.xlu1 %v1649_v55, %s2661_s12 }
0x15ad   :  { %v1749_v46 = vpop.permute.xlu0 %1748 }
0x15b4   :  { %v1753_v56 = vpop.permute.xlu1 %1752 }
0x15b5   :  { %v1755_v57 = vsel %vm230_vm2, %v1749_v46, %v1753_v56 }
0x15b6   :  { %2420 = vmatmul.mubr.msk.f32.vlgmr.msra.gmra.mxu1 %vm334_vm3, %v1755_v57 }
0x1676   :  { %v1825_v58 = vpop.f32.mrf.mxu1 }
0x1677   :  { %v1826_v60 = vadd.f32 %v2588_v59, %v1825_v58 }
0x1678   :  { %v2421_v2 = vpop.f32.mrf.mxu1 }
0x1679   :  { %2563 = vtanh.f32 %v1826_v60  ;;  %v2034_v7 = vmul.f32 -1.442695, %v1826_v60 }
0x167b   :  { %2565 = vpow2.f32 %v2034_v7 }
0x1686   :  { %v2564_v4 = vpop.eup %2563 }
0x1687   :  { %1838 = vrot.lane.b32.xlu0 %v2564_v4, %s2661_s12 }
0x1688   :  { %v2566_v61 = vpop.eup %2565 }
0x1689   :  { %v1832_v8 = vadd.f32 1.0, %v2566_v61 }
0x168b   :  { %2567 = vrcp.f32 %v1832_v8 }
0x1698   :  { %v2568_v62 = vpop.eup %2567 }
0x1699   :  { %v1836_v5 = vmul.f32 %v2568_v62, %v1643_v50 }
0x16f9   :  { %v1839_v63 = vpop.permute.xlu0 %1838 }
0x16fa   :  { %v1841_v1 = vmul.f32 %v2568_v62, %v1839_v63 }
0x16fc   :  { %1843 = vrot.lane.b32.xlu1 %v1841_v1, %s2662_s13 }
0x1700   :  { %1859 = vrot.lane.b32.xlu1 %v2035_v3, %s2663_s5 }
0x176e   :  { %v1844_v6 = vpop.permute.xlu1 %1843 }
0x176f   :  { %v1846_v47 = vadd.f32 %v1844_v6, %v1836_v5 }
0x1771   :  { %2569 = vtanh.f32 %v1846_v47 }
0x1772   :  { %v1860_v13 = vpop.permute.xlu1 %1859 }
0x177e   :  { %v2570_v9 = vpop.eup %2569 }
0x177f   :  { %1849 = vrot.lane.b32.xlu0 %v2570_v9, %s2661_s12  ;;  %s2664_s12 = smov [#allocation7]  }
0x1780   :  { %s1984_s22 = sshll.u32 %s2664_s12, 4  ;;  %s1985_s22 = int_to_ptr.vmem [resolvable:$true] %s1984_s22 }
0x1781   :  { %s2629_s23 = scalar_lea.vmem %s1985_s22, 128  ;;  %p2634_p11 = scmp.lt.s32.totalorder %s1985_s22, %s1985_s22 }
0x1782   :  { %p2630_p10 = scmp.ne.s32.totalorder %s1985_s22, %s2629_s23  ;;  %p2635_p12 = scmp.lt.s32.totalorder %s2629_s23, %s2629_s23 }
0x1783   :  { %1869 = vrot.lane.b32.xlu0 %v2036_v11, %s2663_s5 }
0x1784   :  { %p2636_p13 = por %p2635_p12, %p2634_p11 }
0x1786   :  { %p2637_p0 = pnand %p2636_p13, %p2630_p10 }
0x17f1   :  { %v1850_v12 = vpop.permute.xlu0 %1849 }
0x17f2   :  { %v1852_v14 = vmul.f32 %v2568_v62, %v1850_v12 }
0x17f4   :  { %v1862_v15 = vmul.f32 %v1860_v13, %v1852_v14 }
0x17f5   :  { %v1870_v16 = vpop.permute.xlu0 %1869 }
0x17f6   :  { %v1872_v17 = vadd.f32 %v1870_v16, %v1862_v15 }
0x17f8   :  { %v1873_v18 = vmax.f32 %v1872_v17, 0.0 }
0x17fa   :  { %v1875_v19 = vsel %vm1874_vm4, %v1873_v18, -inf }
0x17fb   :  { %1876 = vmax.xlane.f32.xlu1 %v1875_v19 }
0x1884   :  { %v1877_v20 = vpop.xlane.xlu1 %1876 }
0x1885   :  { %v1878_v21 = vsub.f32 %v1873_v18, %v1877_v20 }
0x1887   :  { %v1879_v22 = vmul.f32 1.442695, %v1878_v21 }
0x1889   :  { %2571 = vpow2.f32 %v1879_v22 }
0x1896   :  { %v2572_v23 = vpop.eup %2571 }
0x1897   :  { %1882 = vrot.lane.b32.xlu0 %v2572_v23, %s2662_s13 }
0x1909   :  { %v1883_v48 = vpop.permute.xlu0 %1882 }
0x190a   :  { %v1885_v24 = vsel %vm230_vm2, %v1883_v48, 0.0 }
0x190b   :  { %1886 = vadd.xlane.f32.xlu0 %v1885_v24 }
0x1994   :  { %v1887_v32 = vpop.xlane.xlu0 %1886 }
0x1995   :  { %2573 = vlog2.f32 %v1887_v32 }
0x19a2   :  { %v2574_v34 = vpop.eup %2573 }
0x19a3   :  { %v1889_v36 = vmul.f32 0.6931472, %v2574_v34 }
0x19a5   :  { %v1890_v49 = vsub.f32 %v1878_v21, %v1889_v36 }
0x19a7   :  { %1903 = vrot.lane.b32.xlu1 %v1890_v49, %s2662_s13 }
0x1a19   :  { %v1904_v38 = vpop.permute.xlu1 %1903 }
0x1a1a   :  { %2431 = vmatmul.mubr.msk.f32.vlgmr.msra.gmra.mxu0 %vm230_vm2, %v1904_v38 }
0x1ada   :  { %v1973_v29 = vpop.f32.mrf.mxu0 }
0x1adb   :  { %v1974_v31 = vadd.f32 %v2037_v26, %v1973_v29 }
0x1adc   :  { %v2432_v0 = vpop.f32.mrf.mxu0 }
0x1add   :  { %1977 = vst [vmem:[#allocation7] sm:$0xff] %v1974_v31 }
0x1ade   :  { %2640 = shalt.err (!%p2637_p0)
}
0x1adf   :  { %1987 = dma.vmem_to_hbm [thread:$0]  %s1985_s22, 128, %s3270_s10, [#allocation4]  }
0x1ae0   :  { %2653 = dma.done.wait [#allocation4], 128  }
0x1ae1   :  { %2654 = vsyncadd [#allocation4], 4294967168 }
0x1ae2   :  { %1991 = vsyncpa [#allocation3], 1 }
0x1ae3   :  { %1992 = vsyncpa [#allocation6], 1 }
0x1ae4   :  { %1993 = vsyncpa [#allocation4], 1 }

</bundles_post_ra>
